<compile_context>
chip_gen: v6e
topology: v6e:2x2x1
jax: 0.10.0
libtpu: 0.0.40
codegen_flags: <defaults>
</compile_context>

<pallas_src>
import jax
import jax.numpy as jnp
import numpy as np
from jax.experimental import pallas as pl
from jax.experimental.pallas import tpu as pltpu

# ----------------------------- configuration --------------------------------
BATCH = 2
SEQ = 8                 # context_length == seqlen for this example
EMBED = 32
NUM_HEADS = 4
HEAD_DIM = EMBED // NUM_HEADS
HALF = HEAD_DIM // 2
INIT_LAMBDA = 0.8
SCALER = HEAD_DIM ** (-0.5)
SQRT_D = HEAD_DIM ** 0.5
EPS = 1e-5
POST_SCALE = 1.0 - INIT_LAMBDA


# ----------------------------- fused Pallas kernel ---------------------------
def _fused_diff_attn_kernel(lam_ref, x_ref, wqkv_ref, cos_ref, sin_ref, g_ref,
                            wmap_ref, bmap_ref, wo_ref, o_ref):
    B, S, E, H, D, Hf = BATCH, SEQ, EMBED, NUM_HEADS, HEAD_DIM, HALF
    BH = B * H
    Eh = E // 2

    x = x_ref[...]                                            # (B*S, E)

    # --- single fused QKV projection: (B*S, E) @ (E, 3E) ------------------------
    # q/k columns are branch-major (branch, head, half-dim); v is head-major;
    # sqrt(head_dim) (= 1/scaler) is pre-folded into the q columns.
    qkv = jnp.dot(x, wqkv_ref[...], preferred_element_type=jnp.float32)
    q = qkv[:, :E]
    k = qkv[:, E:2 * E]
    v = qkv[:, 2 * E:]

    # --- lane-packed RoPE (all heads at once, rotate_half done algebraically) ---
    cos = cos_ref[...]                                        # (B*S, E/2)
    sin = sin_ref[...]
    qa, qb = q[:, :Eh], q[:, Eh:]
    ka, kb = k[:, :Eh], k[:, Eh:]
    q1 = qa * cos - qb * sin                                  # branch-1 (scaled)
    q2 = qb * cos + qa * sin                                  # branch-2 (scaled)
    k1 = ka * cos - kb * sin
    k2 = kb * cos + ka * sin

    # --- lane-packed -> head-batched, only for the S x S score matmuls ----------
    def to_heads(t, hd):   # (B*S, H*hd) -> (B*H, S, hd), n = b*H + h
        return jnp.stack(
            [t[b * S:(b + 1) * S, h * hd:(h + 1) * hd]
             for b in range(B) for h in range(H)], axis=0)

    qh = jnp.concatenate([to_heads(q1, Hf), to_heads(q2, Hf)], axis=0)  # (2BH,S,Hf)
    kh = jnp.concatenate([to_heads(k1, Hf), to_heads(k2, Hf)], axis=0)
    vh = to_heads(v, D)                                                 # (BH,S,D)

    # --- ONE score matmul + ONE softmax for both branches ----------------------
    # NOTE: reference's masked_fill is non-inplace -> no causal mask (faithful).
    s12 = jnp.einsum("nsd,ntd->nst", qh, kh,
                     preferred_element_type=jnp.float32)                # (2BH,S,S)
    m = jnp.max(s12, axis=-1, keepdims=True)
    ex = jnp.exp(s12 - m)
    den = jnp.sum(ex, axis=-1, keepdims=True)
    p = ex * pl.reciprocal(den, approx=False)   # approx=True once S*S tiles grow

    lam = lam_ref[0, 0]
    a = p[:BH] - lam * p[BH:]                                           # (BH,S,S)
    yh = jnp.einsum("nst,ntd->nsd", a, vh,
                    preferred_element_type=jnp.float32)                 # (BH,S,D)

    # --- head-batched -> lane-dense (B*S, E), head-major columns ----------------
    y = jnp.concatenate(
        [jnp.concatenate([yh[b * H + h] for h in range(H)], axis=-1)
         for b in range(B)], axis=0)                                    # (B*S, E)

    # --- GroupNorm on the reference's scrambled layout --------------------------
    # In this layout the groups are blocks of r = S//H consecutive rows (all lanes);
    # g_ref holds the 1/(r*E)-normalized same-group indicator, so group means /
    # variances are a single matvec on lane row-sums.
    row_sum = jnp.sum(y, axis=-1, keepdims=True)                        # (B*S, 1)
    gmean = jnp.dot(g_ref[...], row_sum, preferred_element_type=jnp.float32)
    cen = y - gmean
    row_sq = jnp.sum(cen * cen, axis=-1, keepdims=True)
    gvar = jnp.dot(g_ref[...], row_sq, preferred_element_type=jnp.float32)
    yn = cen * jax.lax.rsqrt(gvar + EPS)
    yaff = yn * wmap_ref[...] + bmap_ref[...]      # POST_SCALE folded into the maps

    # --- single output projection: (B*S, E) @ (E, E), lane-dense store ----------
    out = jnp.dot(yaff, wo_ref[...], preferred_element_type=jnp.float32)
    o_ref[...] = out.astype(o_ref.dtype)


# ----------------------------- parameter prep (once, outside jit) ------------
def precompute_rope(head_dim, context_length):
    inv_freq = 1.0 / (
        10000.0 ** (jnp.arange(0, head_dim, 2, dtype=jnp.float32) / head_dim)
    )
    pos = jnp.arange(context_length, dtype=jnp.float32)
    angles = pos[:, None] * inv_freq[None, :]
    angles = jnp.concatenate([angles, angles], axis=1)        # (L, head_dim)
    return jnp.cos(angles), jnp.sin(angles)


def prepare_params(params):
    """One-time repack of weights into kernel-friendly layouts (not on the fwd path)."""
    E, H, D, S, B, Hf = EMBED, NUM_HEADS, HEAD_DIM, SEQ, BATCH, HALF
    assert S % H == 0, "row-block GroupNorm formulation requires SEQ % NUM_HEADS == 0"

    # packed QKV weights: (E, 3E); q/k columns permuted to branch-major
    # (branch, head, half-dim); sqrt(D) (= 1/scaler) folded into the q columns.
    wt = np.asarray(params["w_qkv"]).T.astype(np.float32)     # (E, 3E); Linear is x @ W^T
    perm = np.empty(E, dtype=np.int64)
    for br in range(2):
        for h in range(H):
            for j in range(Hf):
                perm[br * H * Hf + h * Hf + j] = h * D + br * Hf + j
    wq = wt[:, :E][:, perm] * SQRT_D
    wk = wt[:, E:2 * E][:, perm]
    wv = wt[:, 2 * E:]                                        # head-major (h*D + d)
    wqkv_packed = jnp.asarray(np.concatenate([wq, wk, wv], axis=1))

    # output projection (used as y @ wo^T; y's head-major columns == embed order)
    wo_t = jnp.asarray(np.asarray(params["wo"]).T.astype(np.float32))   # (E, E)

    # half-dim RoPE tables in the branch-major packed lane layout, tiled over
    # heads (lanes) and batch (rows): (B*S, H*HALF)
    cos_h = np.asarray(params["cos"])[:S, :Hf].astype(np.float32)
    sin_h = np.asarray(params["sin"])[:S, :Hf].astype(np.float32)
    cos_t = jnp.asarray(np.tile(np.tile(cos_h, (1, H)), (B, 1)))
    sin_t = jnp.asarray(np.tile(np.tile(sin_h, (1, H)), (B, 1)))

    # group-mean matvec matrix: groups = blocks of r = S//H consecutive rows of the
    # (B*S, E) head-major layout; normalized by the group element count r*E = S*D.
    r = S // H
    rows = np.arange(B * S)
    G = (rows[:, None] // r == rows[None, :] // r).astype(np.float32) / float(r * E)
    G = jnp.asarray(G)

    # scrambled-layout affine maps: channel of element (s, e) is (s*E + e)//S;
    # POST_SCALE = (1 - init_lambda) folded in.
    ss = np.arange(S)[:, None]
    ee = np.arange(E)[None, :]
    ch = (ss * E + ee) // S                                   # (S, E)
    wmap = np.asarray(params["gn_weight"], dtype=np.float32)[ch] * POST_SCALE
    bmap = np.asarray(params["gn_bias"], dtype=np.float32)[ch] * POST_SCALE
    wmap = jnp.asarray(np.tile(wmap, (B, 1)))                 # (B*S, E)
    bmap = jnp.asarray(np.tile(bmap, (B, 1)))

    return {
        "wqkv_packed": wqkv_packed, "wo_t": wo_t,
        "cos_t": cos_t, "sin_t": sin_t,
        "G": G, "wmap": wmap, "bmap": bmap,
        "lambda_q1": params["lambda_q1"], "lambda_k1": params["lambda_k1"],
        "lambda_q2": params["lambda_q2"], "lambda_k2": params["lambda_k2"],
    }


# ----------------------------- forward ---------------------------------------
@jax.jit
def differential_attention_forward(x, prep):
    B, S, E = x.shape
    BS = B * S

    lam1 = jnp.exp(jnp.sum(prep["lambda_q1"] * prep["lambda_k1"]))
    lam2 = jnp.exp(jnp.sum(prep["lambda_q2"] * prep["lambda_k2"]))
    lam = (lam1 - lam2 + INIT_LAMBDA).reshape(1, 1).astype(jnp.float32)

    x_flat = x.reshape(BS, E)     # free XLA reshape; kernel works on one (B*S, E) slab

    def full(shape):
        return pl.BlockSpec(shape, lambda i: (0,) * len(shape))

    out_flat = pl.pallas_call(
        _fused_diff_attn_kernel,
        out_shape=jax.ShapeDtypeStruct((BS, E), jnp.float32),
        grid=(1,),                # single step: no per-batch pipeline overhead
        in_specs=[
            pl.BlockSpec(memory_space=pltpu.MemorySpace.SMEM),   # lambda scalar
            full((BS, E)),                                       # x (flattened)
            full((E, 3 * E)),                                    # packed QKV weights
            full((BS, E // 2)), full((BS, E // 2)),              # packed cos/sin
            full((BS, BS)),                                      # group-mean matvec
            full((BS, E)), full((BS, E)),                        # GN affine maps
            full((E, E)),                                        # wo^T
        ],
        out_specs=full((BS, E)),
        # re-enable a "parallel" batch axis here once per-batch work is >~µs (v7x 2-TC)
        compiler_params=pltpu.CompilerParams(
            dimension_semantics=("arbitrary",)),
    )(lam, x_flat, prep["wqkv_packed"], prep["cos_t"], prep["sin_t"],
      prep["G"], prep["wmap"], prep["bmap"], prep["wo_t"])

    return out_flat.reshape(B, S, E)


# ----------------------------- pure-JAX reference ----------------------------
def reference_forward(x, params):
    B, S, E = x.shape
    H, D = NUM_HEADS, HEAD_DIM
    qkv = x @ params["w_qkv"].T
    q, k, v = jnp.split(qkv, 3, axis=-1)

    def heads(t):
        return t.reshape(B, S, H, D).transpose(0, 2, 1, 3)

    q, k, v = heads(q), heads(k), heads(v)
    cos = params["cos"][:S][None, None]
    sin = params["sin"][:S][None, None]

    def rope(t):
        ta, tb = t[..., :HALF], t[..., HALF:]
        rotated = jnp.concatenate([-tb, ta], axis=-1)
        return t * cos + rotated * sin

    q, k = rope(q), rope(k)
    q1, q2 = q[..., :HALF], q[..., HALF:]
    k1, k2 = k[..., :HALF], k[..., HALF:]

    lam1 = jnp.exp(jnp.sum(params["lambda_q1"] * params["lambda_k1"]))
    lam2 = jnp.exp(jnp.sum(params["lambda_q2"] * params["lambda_k2"]))
    lam = lam1 - lam2 + INIT_LAMBDA

    a1 = jax.nn.softmax((q1 @ jnp.swapaxes(k1, -1, -2)) / SCALER, axis=-1)
    a2 = jax.nn.softmax((q2 @ jnp.swapaxes(k2, -1, -2)) / SCALER, axis=-1)
    out = (a1 - lam * a2) @ v                                   # (B, H, S, D)

    out = out.transpose(0, 2, 1, 3).reshape(B, E, S)            # scrambled layout
    yg = out.reshape(B, NUM_HEADS, HEAD_DIM * S)
    mean = yg.mean(axis=-1, keepdims=True)
    var = ((yg - mean) ** 2).mean(axis=-1, keepdims=True)
    yn = (yg - mean) / jnp.sqrt(var + EPS)
    yn = yn.reshape(B, E, S)
    yn = yn * params["gn_weight"][None, :, None] + params["gn_bias"][None, :, None]
    yn = yn * POST_SCALE
    return yn.reshape(B, S, E) @ params["wo"].T


# ----------------------------- main ------------------------------------------
if __name__ == "__main__":
    key = jax.random.PRNGKey(0)
    k_x, k_qkv, k_wo, k_l1, k_l2, k_l3, k_l4 = jax.random.split(key, 7)

    cos, sin = precompute_rope(HEAD_DIM, SEQ)
    params = {
        "w_qkv": 0.02 * jax.random.normal(k_qkv, (3 * EMBED, EMBED), jnp.float32),
        "wo": 0.02 * jax.random.normal(k_wo, (EMBED, EMBED), jnp.float32),
        "lambda_q1": 0.1 * jax.random.normal(k_l1, (HEAD_DIM,), jnp.float32),
        "lambda_q2": 0.1 * jax.random.normal(k_l2, (HEAD_DIM,), jnp.float32),
        "lambda_k1": 0.1 * jax.random.normal(k_l3, (HEAD_DIM,), jnp.float32),
        "lambda_k2": 0.1 * jax.random.normal(k_l4, (HEAD_DIM,), jnp.float32),
        "gn_weight": jnp.ones((EMBED,), jnp.float32),   # PyTorch GroupNorm default
        "gn_bias": jnp.zeros((EMBED,), jnp.float32),
        "cos": cos,
        "sin": sin,
    }
    prep = prepare_params(params)   # one-time weight repack, outside the fwd path

    x = jax.random.normal(k_x, (BATCH, SEQ, EMBED), jnp.float32)

    out = jax.block_until_ready(differential_attention_forward(x, prep))
    ref = jax.block_until_ready(reference_forward(x, params))
    np.testing.assert_allclose(np.asarray(out), np.asarray(ref), rtol=1e-4, atol=1e-4)

    print("KERNEL_OK")
</pallas_src>

<mosaic_0001>
module attributes {stable_mosaic.version = 11 : i64} {
  func.func @_fused_diff_attn_kernel(%arg0: i32, %arg1: memref<1x1xf32, #tpu.memory_space<smem>>, %arg2: memref<16x32xf32, #tpu.memory_space<vmem>>, %arg3: memref<32x96xf32, #tpu.memory_space<vmem>>, %arg4: memref<16x16xf32, #tpu.memory_space<vmem>>, %arg5: memref<16x16xf32, #tpu.memory_space<vmem>>, %arg6: memref<16x16xf32, #tpu.memory_space<vmem>>, %arg7: memref<16x32xf32, #tpu.memory_space<vmem>>, %arg8: memref<16x32xf32, #tpu.memory_space<vmem>>, %arg9: memref<32x32xf32, #tpu.memory_space<vmem>>, %arg10: memref<16x32xf32, #tpu.memory_space<vmem>>) attributes {dimension_semantics = [#tpu.dimension_semantics<arbitrary>], iteration_bounds = array<i64: 1>, scalar_prefetch = 0 : i64, scratch_operands = 0 : i64, tpu.core_type = #tpu.core_type<tc>, window_params = [{transform_indices = @transform_0, window_bounds = array<i64: 1, 1>}, {pipeline_mode = #tpu.pipeline_mode<synchronous>, transform_indices = @transform_1, window_bounds = array<i64: 16, 32>}, {pipeline_mode = #tpu.pipeline_mode<synchronous>, transform_indices = @transform_2, window_bounds = array<i64: 32, 96>}, {pipeline_mode = #tpu.pipeline_mode<synchronous>, transform_indices = @transform_3, window_bounds = array<i64: 16, 16>}, {pipeline_mode = #tpu.pipeline_mode<synchronous>, transform_indices = @transform_4, window_bounds = array<i64: 16, 16>}, {pipeline_mode = #tpu.pipeline_mode<synchronous>, transform_indices = @transform_5, window_bounds = array<i64: 16, 16>}, {pipeline_mode = #tpu.pipeline_mode<synchronous>, transform_indices = @transform_6, window_bounds = array<i64: 16, 32>}, {pipeline_mode = #tpu.pipeline_mode<synchronous>, transform_indices = @transform_7, window_bounds = array<i64: 16, 32>}, {pipeline_mode = #tpu.pipeline_mode<synchronous>, transform_indices = @transform_8, window_bounds = array<i64: 32, 32>}, {pipeline_mode = #tpu.pipeline_mode<synchronous>, transform_indices = @transform_9, window_bounds = array<i64: 16, 32>}]} {
    %c0 = arith.constant 0 : index
    %c0_0 = arith.constant 0 : index
    %0 = vector.load %arg2[%c0, %c0_0] : memref<16x32xf32, #tpu.memory_space<vmem>>, vector<16x32xf32>
    %c0_1 = arith.constant 0 : index
    %c0_2 = arith.constant 0 : index
    %1 = vector.load %arg3[%c0_1, %c0_2] : memref<32x96xf32, #tpu.memory_space<vmem>>, vector<32x96xf32>
    %cst = arith.constant dense<0.000000e+00> : vector<16x96xf32>
    %2 = tpu.matmul %0, %1, %cst {dimension_numbers = #tpu.dot_dimension_numbers<[1], [0], [0], [1], [0, 0, 1, 1], [], []>} : vector<16x32xf32>, vector<32x96xf32>, vector<16x96xf32> -> vector<16x96xf32>
    %3 = vector.extract_strided_slice %2 {offsets = [0, 0], sizes = [16, 32], strides = [1, 1]} : vector<16x96xf32> to vector<16x32xf32>
    %4 = vector.extract_strided_slice %2 {offsets = [0, 32], sizes = [16, 32], strides = [1, 1]} : vector<16x96xf32> to vector<16x32xf32>
    %5 = vector.extract_strided_slice %2 {offsets = [0, 64], sizes = [16, 32], strides = [1, 1]} : vector<16x96xf32> to vector<16x32xf32>
    %c0_3 = arith.constant 0 : index
    %c0_4 = arith.constant 0 : index
    %6 = vector.load %arg4[%c0_3, %c0_4] : memref<16x16xf32, #tpu.memory_space<vmem>>, vector<16x16xf32>
    %c0_5 = arith.constant 0 : index
    %c0_6 = arith.constant 0 : index
    %7 = vector.load %arg5[%c0_5, %c0_6] : memref<16x16xf32, #tpu.memory_space<vmem>>, vector<16x16xf32>
    %8 = vector.extract_strided_slice %3 {offsets = [0, 0], sizes = [16, 16], strides = [1, 1]} : vector<16x32xf32> to vector<16x16xf32>
    %9 = vector.extract_strided_slice %3 {offsets = [0, 16], sizes = [16, 16], strides = [1, 1]} : vector<16x32xf32> to vector<16x16xf32>
    %10 = vector.extract_strided_slice %4 {offsets = [0, 0], sizes = [16, 16], strides = [1, 1]} : vector<16x32xf32> to vector<16x16xf32>
    %11 = vector.extract_strided_slice %4 {offsets = [0, 16], sizes = [16, 16], strides = [1, 1]} : vector<16x32xf32> to vector<16x16xf32>
    %12 = arith.mulf %8, %6 : vector<16x16xf32>
    %13 = arith.mulf %9, %7 : vector<16x16xf32>
    %14 = arith.subf %12, %13 : vector<16x16xf32>
    %15 = arith.mulf %9, %6 : vector<16x16xf32>
    %16 = arith.mulf %8, %7 : vector<16x16xf32>
    %17 = arith.addf %15, %16 : vector<16x16xf32>
    %18 = arith.mulf %10, %6 : vector<16x16xf32>
    %19 = arith.mulf %11, %7 : vector<16x16xf32>
    %20 = arith.subf %18, %19 : vector<16x16xf32>
    %21 = arith.mulf %11, %6 : vector<16x16xf32>
    %22 = arith.mulf %10, %7 : vector<16x16xf32>
    %23 = arith.addf %21, %22 : vector<16x16xf32>
    %24 = vector.extract_strided_slice %14 {offsets = [0, 0], sizes = [8, 4], strides = [1, 1]} : vector<16x16xf32> to vector<8x4xf32>
    %25 = vector.extract_strided_slice %14 {offsets = [0, 4], sizes = [8, 4], strides = [1, 1]} : vector<16x16xf32> to vector<8x4xf32>
    %26 = vector.extract_strided_slice %14 {offsets = [0, 8], sizes = [8, 4], strides = [1, 1]} : vector<16x16xf32> to vector<8x4xf32>
    %27 = vector.extract_strided_slice %14 {offsets = [0, 12], sizes = [8, 4], strides = [1, 1]} : vector<16x16xf32> to vector<8x4xf32>
    %28 = vector.extract_strided_slice %14 {offsets = [8, 0], sizes = [8, 4], strides = [1, 1]} : vector<16x16xf32> to vector<8x4xf32>
    %29 = vector.extract_strided_slice %14 {offsets = [8, 4], sizes = [8, 4], strides = [1, 1]} : vector<16x16xf32> to vector<8x4xf32>
    %30 = vector.extract_strided_slice %14 {offsets = [8, 8], sizes = [8, 4], strides = [1, 1]} : vector<16x16xf32> to vector<8x4xf32>
    %31 = vector.extract_strided_slice %14 {offsets = [8, 12], sizes = [8, 4], strides = [1, 1]} : vector<16x16xf32> to vector<8x4xf32>
    %32 = vector.shape_cast %24 : vector<8x4xf32> to vector<1x8x4xf32>
    %33 = vector.shape_cast %25 : vector<8x4xf32> to vector<1x8x4xf32>
    %34 = vector.shape_cast %26 : vector<8x4xf32> to vector<1x8x4xf32>
    %35 = vector.shape_cast %27 : vector<8x4xf32> to vector<1x8x4xf32>
    %36 = vector.shape_cast %28 : vector<8x4xf32> to vector<1x8x4xf32>
    %37 = vector.shape_cast %29 : vector<8x4xf32> to vector<1x8x4xf32>
    %38 = vector.shape_cast %30 : vector<8x4xf32> to vector<1x8x4xf32>
    %39 = vector.shape_cast %31 : vector<8x4xf32> to vector<1x8x4xf32>
    %40 = tpu.concatenate %32, %33, %34, %35, %36, %37, %38, %39 in 0 : vector<1x8x4xf32>, vector<1x8x4xf32>, vector<1x8x4xf32>, vector<1x8x4xf32>, vector<1x8x4xf32>, vector<1x8x4xf32>, vector<1x8x4xf32>, vector<1x8x4xf32> -> vector<8x8x4xf32>
    %41 = vector.extract_strided_slice %17 {offsets = [0, 0], sizes = [8, 4], strides = [1, 1]} : vector<16x16xf32> to vector<8x4xf32>
    %42 = vector.extract_strided_slice %17 {offsets = [0, 4], sizes = [8, 4], strides = [1, 1]} : vector<16x16xf32> to vector<8x4xf32>
    %43 = vector.extract_strided_slice %17 {offsets = [0, 8], sizes = [8, 4], strides = [1, 1]} : vector<16x16xf32> to vector<8x4xf32>
    %44 = vector.extract_strided_slice %17 {offsets = [0, 12], sizes = [8, 4], strides = [1, 1]} : vector<16x16xf32> to vector<8x4xf32>
    %45 = vector.extract_strided_slice %17 {offsets = [8, 0], sizes = [8, 4], strides = [1, 1]} : vector<16x16xf32> to vector<8x4xf32>
    %46 = vector.extract_strided_slice %17 {offsets = [8, 4], sizes = [8, 4], strides = [1, 1]} : vector<16x16xf32> to vector<8x4xf32>
    %47 = vector.extract_strided_slice %17 {offsets = [8, 8], sizes = [8, 4], strides = [1, 1]} : vector<16x16xf32> to vector<8x4xf32>
    %48 = vector.extract_strided_slice %17 {offsets = [8, 12], sizes = [8, 4], strides = [1, 1]} : vector<16x16xf32> to vector<8x4xf32>
    %49 = vector.shape_cast %41 : vector<8x4xf32> to vector<1x8x4xf32>
    %50 = vector.shape_cast %42 : vector<8x4xf32> to vector<1x8x4xf32>
    %51 = vector.shape_cast %43 : vector<8x4xf32> to vector<1x8x4xf32>
    %52 = vector.shape_cast %44 : vector<8x4xf32> to vector<1x8x4xf32>
    %53 = vector.shape_cast %45 : vector<8x4xf32> to vector<1x8x4xf32>
    %54 = vector.shape_cast %46 : vector<8x4xf32> to vector<1x8x4xf32>
    %55 = vector.shape_cast %47 : vector<8x4xf32> to vector<1x8x4xf32>
    %56 = vector.shape_cast %48 : vector<8x4xf32> to vector<1x8x4xf32>
    %57 = tpu.concatenate %49, %50, %51, %52, %53, %54, %55, %56 in 0 : vector<1x8x4xf32>, vector<1x8x4xf32>, vector<1x8x4xf32>, vector<1x8x4xf32>, vector<1x8x4xf32>, vector<1x8x4xf32>, vector<1x8x4xf32>, vector<1x8x4xf32> -> vector<8x8x4xf32>
    %58 = tpu.concatenate %40, %57 in 0 : vector<8x8x4xf32>, vector<8x8x4xf32> -> vector<16x8x4xf32>
    %59 = vector.extract_strided_slice %20 {offsets = [0, 0], sizes = [8, 4], strides = [1, 1]} : vector<16x16xf32> to vector<8x4xf32>
    %60 = vector.extract_strided_slice %20 {offsets = [0, 4], sizes = [8, 4], strides = [1, 1]} : vector<16x16xf32> to vector<8x4xf32>
    %61 = vector.extract_strided_slice %20 {offsets = [0, 8], sizes = [8, 4], strides = [1, 1]} : vector<16x16xf32> to vector<8x4xf32>
    %62 = vector.extract_strided_slice %20 {offsets = [0, 12], sizes = [8, 4], strides = [1, 1]} : vector<16x16xf32> to vector<8x4xf32>
    %63 = vector.extract_strided_slice %20 {offsets = [8, 0], sizes = [8, 4], strides = [1, 1]} : vector<16x16xf32> to vector<8x4xf32>
    %64 = vector.extract_strided_slice %20 {offsets = [8, 4], sizes = [8, 4], strides = [1, 1]} : vector<16x16xf32> to vector<8x4xf32>
    %65 = vector.extract_strided_slice %20 {offsets = [8, 8], sizes = [8, 4], strides = [1, 1]} : vector<16x16xf32> to vector<8x4xf32>
    %66 = vector.extract_strided_slice %20 {offsets = [8, 12], sizes = [8, 4], strides = [1, 1]} : vector<16x16xf32> to vector<8x4xf32>
    %67 = vector.shape_cast %59 : vector<8x4xf32> to vector<1x8x4xf32>
    %68 = vector.shape_cast %60 : vector<8x4xf32> to vector<1x8x4xf32>
    %69 = vector.shape_cast %61 : vector<8x4xf32> to vector<1x8x4xf32>
    %70 = vector.shape_cast %62 : vector<8x4xf32> to vector<1x8x4xf32>
    %71 = vector.shape_cast %63 : vector<8x4xf32> to vector<1x8x4xf32>
    %72 = vector.shape_cast %64 : vector<8x4xf32> to vector<1x8x4xf32>
    %73 = vector.shape_cast %65 : vector<8x4xf32> to vector<1x8x4xf32>
    %74 = vector.shape_cast %66 : vector<8x4xf32> to vector<1x8x4xf32>
    %75 = tpu.concatenate %67, %68, %69, %70, %71, %72, %73, %74 in 0 : vector<1x8x4xf32>, vector<1x8x4xf32>, vector<1x8x4xf32>, vector<1x8x4xf32>, vector<1x8x4xf32>, vector<1x8x4xf32>, vector<1x8x4xf32>, vector<1x8x4xf32> -> vector<8x8x4xf32>
    %76 = vector.extract_strided_slice %23 {offsets = [0, 0], sizes = [8, 4], strides = [1, 1]} : vector<16x16xf32> to vector<8x4xf32>
    %77 = vector.extract_strided_slice %23 {offsets = [0, 4], sizes = [8, 4], strides = [1, 1]} : vector<16x16xf32> to vector<8x4xf32>
    %78 = vector.extract_strided_slice %23 {offsets = [0, 8], sizes = [8, 4], strides = [1, 1]} : vector<16x16xf32> to vector<8x4xf32>
    %79 = vector.extract_strided_slice %23 {offsets = [0, 12], sizes = [8, 4], strides = [1, 1]} : vector<16x16xf32> to vector<8x4xf32>
    %80 = vector.extract_strided_slice %23 {offsets = [8, 0], sizes = [8, 4], strides = [1, 1]} : vector<16x16xf32> to vector<8x4xf32>
    %81 = vector.extract_strided_slice %23 {offsets = [8, 4], sizes = [8, 4], strides = [1, 1]} : vector<16x16xf32> to vector<8x4xf32>
    %82 = vector.extract_strided_slice %23 {offsets = [8, 8], sizes = [8, 4], strides = [1, 1]} : vector<16x16xf32> to vector<8x4xf32>
    %83 = vector.extract_strided_slice %23 {offsets = [8, 12], sizes = [8, 4], strides = [1, 1]} : vector<16x16xf32> to vector<8x4xf32>
    %84 = vector.shape_cast %76 : vector<8x4xf32> to vector<1x8x4xf32>
    %85 = vector.shape_cast %77 : vector<8x4xf32> to vector<1x8x4xf32>
    %86 = vector.shape_cast %78 : vector<8x4xf32> to vector<1x8x4xf32>
    %87 = vector.shape_cast %79 : vector<8x4xf32> to vector<1x8x4xf32>
    %88 = vector.shape_cast %80 : vector<8x4xf32> to vector<1x8x4xf32>
    %89 = vector.shape_cast %81 : vector<8x4xf32> to vector<1x8x4xf32>
    %90 = vector.shape_cast %82 : vector<8x4xf32> to vector<1x8x4xf32>
    %91 = vector.shape_cast %83 : vector<8x4xf32> to vector<1x8x4xf32>
    %92 = tpu.concatenate %84, %85, %86, %87, %88, %89, %90, %91 in 0 : vector<1x8x4xf32>, vector<1x8x4xf32>, vector<1x8x4xf32>, vector<1x8x4xf32>, vector<1x8x4xf32>, vector<1x8x4xf32>, vector<1x8x4xf32>, vector<1x8x4xf32> -> vector<8x8x4xf32>
    %93 = tpu.concatenate %75, %92 in 0 : vector<8x8x4xf32>, vector<8x8x4xf32> -> vector<16x8x4xf32>
    %94 = vector.extract_strided_slice %5 {offsets = [0, 0], sizes = [8, 8], strides = [1, 1]} : vector<16x32xf32> to vector<8x8xf32>
    %95 = vector.extract_strided_slice %5 {offsets = [0, 8], sizes = [8, 8], strides = [1, 1]} : vector<16x32xf32> to vector<8x8xf32>
    %96 = vector.extract_strided_slice %5 {offsets = [0, 16], sizes = [8, 8], strides = [1, 1]} : vector<16x32xf32> to vector<8x8xf32>
    %97 = vector.extract_strided_slice %5 {offsets = [0, 24], sizes = [8, 8], strides = [1, 1]} : vector<16x32xf32> to vector<8x8xf32>
    %98 = vector.extract_strided_slice %5 {offsets = [8, 0], sizes = [8, 8], strides = [1, 1]} : vector<16x32xf32> to vector<8x8xf32>
    %99 = vector.extract_strided_slice %5 {offsets = [8, 8], sizes = [8, 8], strides = [1, 1]} : vector<16x32xf32> to vector<8x8xf32>
    %100 = vector.extract_strided_slice %5 {offsets = [8, 16], sizes = [8, 8], strides = [1, 1]} : vector<16x32xf32> to vector<8x8xf32>
    %101 = vector.extract_strided_slice %5 {offsets = [8, 24], sizes = [8, 8], strides = [1, 1]} : vector<16x32xf32> to vector<8x8xf32>
    %102 = vector.shape_cast %94 : vector<8x8xf32> to vector<1x8x8xf32>
    %103 = vector.shape_cast %95 : vector<8x8xf32> to vector<1x8x8xf32>
    %104 = vector.shape_cast %96 : vector<8x8xf32> to vector<1x8x8xf32>
    %105 = vector.shape_cast %97 : vector<8x8xf32> to vector<1x8x8xf32>
    %106 = vector.shape_cast %98 : vector<8x8xf32> to vector<1x8x8xf32>
    %107 = vector.shape_cast %99 : vector<8x8xf32> to vector<1x8x8xf32>
    %108 = vector.shape_cast %100 : vector<8x8xf32> to vector<1x8x8xf32>
    %109 = vector.shape_cast %101 : vector<8x8xf32> to vector<1x8x8xf32>
    %110 = tpu.concatenate %102, %103, %104, %105, %106, %107, %108, %109 in 0 : vector<1x8x8xf32>, vector<1x8x8xf32>, vector<1x8x8xf32>, vector<1x8x8xf32>, vector<1x8x8xf32>, vector<1x8x8xf32>, vector<1x8x8xf32>, vector<1x8x8xf32> -> vector<8x8x8xf32>
    "tpu.trace_start"() <{level = 10 : i32, message = "nsd,ntd->nst"}> : () -> ()
    %cst_7 = arith.constant dense<0.000000e+00> : vector<16x8x8xf32>
    %111 = tpu.matmul %58, %93, %cst_7 {dimension_numbers = #tpu.dot_dimension_numbers<[2], [2], [1], [1], [0, 0, 0, 1, 1, 1], [0], [0]>} : vector<16x8x4xf32>, vector<16x8x4xf32>, vector<16x8x8xf32> -> vector<16x8x8xf32>
    "tpu.trace_stop"() : () -> ()
    %cst_8 = arith.constant dense<0xFF800000> : vector<16x8xf32>
    %112 = vector.multi_reduction <maximumf>, %111, %cst_8 [2] : vector<16x8x8xf32> to vector<16x8xf32>
    %113 = vector.shape_cast %112 : vector<16x8xf32> to vector<16x8x1xf32>
    %114 = vector.broadcast %113 : vector<16x8x1xf32> to vector<16x8x8xf32>
    %115 = arith.subf %111, %114 : vector<16x8x8xf32>
    %116 = math.exp %115 : vector<16x8x8xf32>
    %cst_9 = arith.constant dense<0.000000e+00> : vector<16x8xf32>
    %117 = vector.multi_reduction <add>, %116, %cst_9 [2] : vector<16x8x8xf32> to vector<16x8xf32>
    %118 = vector.shape_cast %117 : vector<16x8xf32> to vector<16x8x1xf32>
    %119 = tpu.reciprocal %118 : vector<16x8x1xf32> -> vector<16x8x1xf32>
    %120 = vector.broadcast %119 : vector<16x8x1xf32> to vector<16x8x8xf32>
    %121 = arith.mulf %116, %120 : vector<16x8x8xf32>
    %c0_10 = arith.constant 0 : index
    %c0_11 = arith.constant 0 : index
    %122 = memref.load %arg1[%c0_10, %c0_11] : memref<1x1xf32, #tpu.memory_space<smem>>
    %123 = vector.extract_strided_slice %121 {offsets = [0, 0, 0], sizes = [8, 8, 8], strides = [1, 1, 1]} : vector<16x8x8xf32> to vector<8x8x8xf32>
    %124 = vector.extract_strided_slice %121 {offsets = [8, 0, 0], sizes = [8, 8, 8], strides = [1, 1, 1]} : vector<16x8x8xf32> to vector<8x8x8xf32>
    %125 = vector.broadcast %122 : f32 to vector<8x8x8xf32>
    %126 = arith.mulf %125, %124 : vector<8x8x8xf32>
    %127 = arith.subf %123, %126 : vector<8x8x8xf32>
    "tpu.trace_start"() <{level = 10 : i32, message = "nst,ntd->nsd"}> : () -> ()
    %cst_12 = arith.constant dense<0.000000e+00> : vector<8x8x8xf32>
    %128 = tpu.matmul %127, %110, %cst_12 {dimension_numbers = #tpu.dot_dimension_numbers<[2], [1], [1], [2], [0, 0, 0, 1, 1, 2], [0], [0]>} : vector<8x8x8xf32>, vector<8x8x8xf32>, vector<8x8x8xf32> -> vector<8x8x8xf32>
    "tpu.trace_stop"() : () -> ()
    %129 = vector.extract_strided_slice %128 {offsets = [0, 0, 0], sizes = [1, 8, 8], strides = [1, 1, 1]} : vector<8x8x8xf32> to vector<1x8x8xf32>
    %130 = vector.shape_cast %129 : vector<1x8x8xf32> to vector<8x8xf32>
    %131 = vector.extract_strided_slice %128 {offsets = [1, 0, 0], sizes = [1, 8, 8], strides = [1, 1, 1]} : vector<8x8x8xf32> to vector<1x8x8xf32>
    %132 = vector.shape_cast %131 : vector<1x8x8xf32> to vector<8x8xf32>
    %133 = vector.extract_strided_slice %128 {offsets = [2, 0, 0], sizes = [1, 8, 8], strides = [1, 1, 1]} : vector<8x8x8xf32> to vector<1x8x8xf32>
    %134 = vector.shape_cast %133 : vector<1x8x8xf32> to vector<8x8xf32>
    %135 = vector.extract_strided_slice %128 {offsets = [3, 0, 0], sizes = [1, 8, 8], strides = [1, 1, 1]} : vector<8x8x8xf32> to vector<1x8x8xf32>
    %136 = vector.shape_cast %135 : vector<1x8x8xf32> to vector<8x8xf32>
    %137 = tpu.concatenate %130, %132, %134, %136 in 1 : vector<8x8xf32>, vector<8x8xf32>, vector<8x8xf32>, vector<8x8xf32> -> vector<8x32xf32>
    %138 = vector.extract_strided_slice %128 {offsets = [4, 0, 0], sizes = [1, 8, 8], strides = [1, 1, 1]} : vector<8x8x8xf32> to vector<1x8x8xf32>
    %139 = vector.shape_cast %138 : vector<1x8x8xf32> to vector<8x8xf32>
    %140 = vector.extract_strided_slice %128 {offsets = [5, 0, 0], sizes = [1, 8, 8], strides = [1, 1, 1]} : vector<8x8x8xf32> to vector<1x8x8xf32>
    %141 = vector.shape_cast %140 : vector<1x8x8xf32> to vector<8x8xf32>
    %142 = vector.extract_strided_slice %128 {offsets = [6, 0, 0], sizes = [1, 8, 8], strides = [1, 1, 1]} : vector<8x8x8xf32> to vector<1x8x8xf32>
    %143 = vector.shape_cast %142 : vector<1x8x8xf32> to vector<8x8xf32>
    %144 = vector.extract_strided_slice %128 {offsets = [7, 0, 0], sizes = [1, 8, 8], strides = [1, 1, 1]} : vector<8x8x8xf32> to vector<1x8x8xf32>
    %145 = vector.shape_cast %144 : vector<1x8x8xf32> to vector<8x8xf32>
    %146 = tpu.concatenate %139, %141, %143, %145 in 1 : vector<8x8xf32>, vector<8x8xf32>, vector<8x8xf32>, vector<8x8xf32> -> vector<8x32xf32>
    %147 = tpu.concatenate %137, %146 in 0 : vector<8x32xf32>, vector<8x32xf32> -> vector<16x32xf32>
    %cst_13 = arith.constant dense<0.000000e+00> : vector<16xf32>
    %148 = vector.multi_reduction <add>, %147, %cst_13 [1] : vector<16x32xf32> to vector<16xf32>
    %149 = vector.shape_cast %148 : vector<16xf32> to vector<16x1xf32>
    %c0_14 = arith.constant 0 : index
    %c0_15 = arith.constant 0 : index
    %150 = vector.load %arg6[%c0_14, %c0_15] : memref<16x16xf32, #tpu.memory_space<vmem>>, vector<16x16xf32>
    %cst_16 = arith.constant dense<0.000000e+00> : vector<16x1xf32>
    %151 = tpu.matmul %150, %149, %cst_16 {dimension_numbers = #tpu.dot_dimension_numbers<[1], [0], [0], [1], [0, 0, 1, 1], [], []>} : vector<16x16xf32>, vector<16x1xf32>, vector<16x1xf32> -> vector<16x1xf32>
    %152 = vector.broadcast %151 : vector<16x1xf32> to vector<16x32xf32>
    %153 = arith.subf %147, %152 : vector<16x32xf32>
    %154 = arith.mulf %153, %153 : vector<16x32xf32>
    %cst_17 = arith.constant dense<0.000000e+00> : vector<16xf32>
    %155 = vector.multi_reduction <add>, %154, %cst_17 [1] : vector<16x32xf32> to vector<16xf32>
    %156 = vector.shape_cast %155 : vector<16xf32> to vector<16x1xf32>
    %c0_18 = arith.constant 0 : index
    %c0_19 = arith.constant 0 : index
    %157 = vector.load %arg6[%c0_18, %c0_19] : memref<16x16xf32, #tpu.memory_space<vmem>>, vector<16x16xf32>
    %cst_20 = arith.constant dense<0.000000e+00> : vector<16x1xf32>
    %158 = tpu.matmul %157, %156, %cst_20 {dimension_numbers = #tpu.dot_dimension_numbers<[1], [0], [0], [1], [0, 0, 1, 1], [], []>} : vector<16x16xf32>, vector<16x1xf32>, vector<16x1xf32> -> vector<16x1xf32>
    %cst_21 = arith.constant 9.99999974E-6 : f32
    %159 = vector.broadcast %cst_21 : f32 to vector<16x1xf32>
    %160 = arith.addf %158, %159 : vector<16x1xf32>
    %161 = math.rsqrt %160 : vector<16x1xf32>
    %162 = vector.broadcast %161 : vector<16x1xf32> to vector<16x32xf32>
    %163 = arith.mulf %153, %162 : vector<16x32xf32>
    %c0_22 = arith.constant 0 : index
    %c0_23 = arith.constant 0 : index
    %164 = vector.load %arg7[%c0_22, %c0_23] : memref<16x32xf32, #tpu.memory_space<vmem>>, vector<16x32xf32>
    %165 = arith.mulf %163, %164 : vector<16x32xf32>
    %c0_24 = arith.constant 0 : index
    %c0_25 = arith.constant 0 : index
    %166 = vector.load %arg8[%c0_24, %c0_25] : memref<16x32xf32, #tpu.memory_space<vmem>>, vector<16x32xf32>
    %167 = arith.addf %165, %166 : vector<16x32xf32>
    %c0_26 = arith.constant 0 : index
    %c0_27 = arith.constant 0 : index
    %168 = vector.load %arg9[%c0_26, %c0_27] : memref<32x32xf32, #tpu.memory_space<vmem>>, vector<32x32xf32>
    %cst_28 = arith.constant dense<0.000000e+00> : vector<16x32xf32>
    %169 = tpu.matmul %167, %168, %cst_28 {dimension_numbers = #tpu.dot_dimension_numbers<[1], [0], [0], [1], [0, 0, 1, 1], [], []>} : vector<16x32xf32>, vector<32x32xf32>, vector<16x32xf32> -> vector<16x32xf32>
    %c0_29 = arith.constant 0 : index
    %c0_30 = arith.constant 0 : index
    %170 = vector.load %arg10[%c0_29, %c0_30] : memref<16x32xf32, #tpu.memory_space<vmem>>, vector<16x32xf32>
    tpu.vector_store %arg10[%c0_29, %c0_30], %169 {strides = array<i32>} : memref<16x32xf32, #tpu.memory_space<vmem>>, vector<16x32xf32>,
    return
  }
  func.func @transform_0(%arg0: i32) -> (i32, i32) {
    %c0_i32 = arith.constant 0 : i32
    %c0_i32_0 = arith.constant 0 : i32
    %c0_i32_1 = arith.constant 0 : i32
    return %c0_i32, %c0_i32_0 : i32, i32
  }
  func.func @transform_1(%arg0: i32) -> (i32, i32) {
    %c0_i32 = arith.constant 0 : i32
    %c0_i32_0 = arith.constant 0 : i32
    %c0_i32_1 = arith.constant 0 : i32
    return %c0_i32, %c0_i32_0 : i32, i32
  }
  func.func @transform_2(%arg0: i32) -> (i32, i32) {
    %c0_i32 = arith.constant 0 : i32
    %c0_i32_0 = arith.constant 0 : i32
    %c0_i32_1 = arith.constant 0 : i32
    return %c0_i32, %c0_i32_0 : i32, i32
  }
  func.func @transform_3(%arg0: i32) -> (i32, i32) {
    %c0_i32 = arith.constant 0 : i32
    %c0_i32_0 = arith.constant 0 : i32
    %c0_i32_1 = arith.constant 0 : i32
    return %c0_i32, %c0_i32_0 : i32, i32
  }
  func.func @transform_4(%arg0: i32) -> (i32, i32) {
    %c0_i32 = arith.constant 0 : i32
    %c0_i32_0 = arith.constant 0 : i32
    %c0_i32_1 = arith.constant 0 : i32
    return %c0_i32, %c0_i32_0 : i32, i32
  }
  func.func @transform_5(%arg0: i32) -> (i32, i32) {
    %c0_i32 = arith.constant 0 : i32
    %c0_i32_0 = arith.constant 0 : i32
    %c0_i32_1 = arith.constant 0 : i32
    return %c0_i32, %c0_i32_0 : i32, i32
  }
  func.func @transform_6(%arg0: i32) -> (i32, i32) {
    %c0_i32 = arith.constant 0 : i32
    %c0_i32_0 = arith.constant 0 : i32
    %c0_i32_1 = arith.constant 0 : i32
    return %c0_i32, %c0_i32_0 : i32, i32
  }
  func.func @transform_7(%arg0: i32) -> (i32, i32) {
    %c0_i32 = arith.constant 0 : i32
    %c0_i32_0 = arith.constant 0 : i32
    %c0_i32_1 = arith.constant 0 : i32
    return %c0_i32, %c0_i32_0 : i32, i32
  }
  func.func @transform_8(%arg0: i32) -> (i32, i32) {
    %c0_i32 = arith.constant 0 : i32
    %c0_i32_0 = arith.constant 0 : i32
    %c0_i32_1 = arith.constant 0 : i32
    return %c0_i32, %c0_i32_0 : i32, i32
  }
  func.func @transform_9(%arg0: i32) -> (i32, i32) {
    %c0_i32 = arith.constant 0 : i32
    %c0_i32_0 = arith.constant 0 : i32
    %c0_i32_1 = arith.constant 0 : i32
    return %c0_i32, %c0_i32_0 : i32, i32
  }
}

</mosaic_0001>

<bundles_post_ra>
// kernel: differential_attention_forward.1
= control target key start
LH: loop header
LB: loop body
LE: loop exit
PB: predicated region body
PF: predicated region fallthrough
CT: control target
= control target key end

     0   :  { %15 = vsyncpa [#allocation4], 0  ;;  %s3897_s0 = inlined_call_operand.<no memory space> [shape: f32[1,1], index: 0, kind: input, shape index: {}]   ;;  %s3898_s1 = inlined_call_operand.hbm [shape: f32[16,32], index: 1, kind: input, shape index: {}]   ;;  %s3899_s2 = inlined_call_operand.vmem [shape: f32[32,96], index: 2, kind: input, shape index: {}]   ;;  %s3900_s3 = inlined_call_operand.hbm [shape: f32[16,16], index: 3, kind: input, shape index: {}]   ;;  %s3901_s4 = inlined_call_operand.hbm [shape: f32[16,16], index: 4, kind: input, shape index: {}]   ;;  %s3902_s5 = inlined_call_operand.hbm [shape: f32[16,16], index: 5, kind: input, shape index: {}]   ;;  %s3903_s6 = inlined_call_operand.hbm [shape: f32[16,32], index: 6, kind: input, shape index: {}]   ;;  %s3904_s7 = inlined_call_operand.hbm [shape: f32[16,32], index: 7, kind: input, shape index: {}]   ;;  %s3905_s8 = inlined_call_operand.hbm [shape: f32[32,32], index: 8, kind: input, shape index: {}]   ;;  %s3906_s9 = inlined_call_operand.hbm [shape: f32[16,32], index: 9, kind: output, shape index: {}]  }
   0x1   :  { %16 = vsyncpa [#allocation7], 0 }
   0x2   :  { %17 = vsyncpa [#allocation10], 0 }
   0x3   :  { %18 = vsyncpa [#allocation13], 0 }
   0x4   :  { %19 = vsyncpa [#allocation5], 0  ;;  %s3320_s30 = smov [#allocation6]   ;;  %s3321_s11 = smov [#allocation9]  }
   0x5   :  { %s41_s10 = sshll.u32 %s3320_s30, 4  ;;  %s65_s12 = sshll.u32 %s3321_s11, 4  ;;  %s42_s10 = int_to_ptr.vmem [resolvable:$true] %s41_s10  ;;  %s66_s12 = int_to_ptr.vmem [resolvable:$true] %s65_s12 }
   0x6   :  { %s3158_s13 = scalar_lea.vmem %s42_s10, 256  ;;  %p3163_p1 = scmp.lt.s32.totalorder %s42_s10, %s42_s10 }
   0x7   :  { %p3159_p0 = scmp.ne.s32.totalorder %s42_s10, %s3158_s13  ;;  %p3164_p2 = scmp.lt.s32.totalorder %s3158_s13, %s3158_s13 }
   0x9   :  { %p3165_p3 = por %p3164_p2, %p3163_p1 }
   0xb   :  { %p3166_p4 = pnand %p3165_p3, %p3159_p0 }
   0xd   :  { %3169 = shalt.err (!%p3166_p4)
}
   0xe   :  { %s3322_s14 = smov 128   ;;  %s3323_s15 = smov 8  }
   0xf   :  { %47 = dma.hbm_to_vmem [thread:$0]  %s3900_s3, 256, %s42_s10, [#allocation7], %s3322_s14, %s3322_s14, %s3323_s15  }
  0x10   :  { %s3178_s18 = scalar_lea.vmem %s66_s12, 256  ;;  %p3183_p6 = scmp.lt.s32.totalorder %s66_s12, %s66_s12 }
  0x11   :  { %p3179_p5 = scmp.ne.s32.totalorder %s66_s12, %s3178_s18  ;;  %p3184_p7 = scmp.lt.s32.totalorder %s3178_s18, %s3178_s18 }
  0x13   :  { %p3185_p8 = por %p3184_p7, %p3183_p6 }
  0x15   :  { %p3186_p9 = pnand %p3185_p8, %p3179_p5 }
  0x17   :  { %3189 = shalt.err (!%p3186_p9)
}
  0x18   :  { %71 = dma.hbm_to_vmem [thread:$0]  %s3902_s5, 256, %s66_s12, [#allocation10], %s3322_s14, %s3322_s14, %s3323_s15  }
  0x19   :  { %s3324_s21 = smov [#allocation12]   ;;  %s3325_s23 = smov [#allocation3]  }
  0x1a   :  { %s89_s22 = sshll.u32 %s3324_s21, 4  ;;  %s27_s24 = sshll.u32 %s3325_s23, 4  ;;  %s90_s22 = int_to_ptr.vmem [resolvable:$true] %s89_s22  ;;  %s28_s24 = int_to_ptr.vmem [resolvable:$true] %s27_s24 }
  0x1b   :  { %s3198_s3 = scalar_lea.vmem %s90_s22, 256  ;;  %p3203_p11 = scmp.lt.s32.totalorder %s90_s22, %s90_s22 }
  0x1c   :  { %p3199_p10 = scmp.ne.s32.totalorder %s90_s22, %s3198_s3  ;;  %p3204_p12 = scmp.lt.s32.totalorder %s3198_s3, %s3198_s3 }
  0x1e   :  { %p3205_p13 = por %p3204_p12, %p3203_p11 }
  0x20   :  { %p3206_p0 = pnand %p3205_p13, %p3199_p10 }
  0x22   :  { %3209 = shalt.err (!%p3206_p0)
}
  0x23   :  { %95 = dma.hbm_to_vmem [thread:$0]  %s3904_s7, 256, %s90_s22, [#allocation13], %s3322_s14, %s3322_s14, %s3323_s15  }
  0x24   :  { %s3218_s5 = scalar_lea.vmem %s28_s24, 256  ;;  %p3223_p2 = scmp.lt.s32.totalorder %s28_s24, %s28_s24 }
  0x25   :  { %p3219_p1 = scmp.ne.s32.totalorder %s28_s24, %s3218_s5  ;;  %p3224_p3 = scmp.lt.s32.totalorder %s3218_s5, %s3218_s5 }
  0x27   :  { %p3225_p4 = por %p3224_p3, %p3223_p2 }
  0x29   :  { %p3226_p5 = pnand %p3225_p4, %p3219_p1 }
  0x2b   :  { %3229 = shalt.err (!%p3226_p5)
}
  0x2c   :  { %33 = dma.hbm_to_vmem [thread:$0]  %s3898_s1, 256, %s28_s24, [#allocation4], %s3322_s14, %s3322_s14, %s3323_s15  }
  0x2d   :  { %s3326_s29 = smov [#allocation8]   ;;  %s3327_s10 = smov [#allocation11]  }
  0x2e   :  { %s53_s30 = sshll.u32 %s3326_s29, 4  ;;  %s77_s11 = sshll.u32 %s3327_s10, 4  ;;  %s54_s30 = int_to_ptr.vmem [resolvable:$true] %s53_s30  ;;  %s78_s11 = int_to_ptr.vmem [resolvable:$true] %s77_s11 }
  0x2f   :  { %s3238_s7 = scalar_lea.vmem %s54_s30, 256  ;;  %p3243_p7 = scmp.lt.s32.totalorder %s54_s30, %s54_s30 }
  0x30   :  { %p3239_p6 = scmp.ne.s32.totalorder %s54_s30, %s3238_s7  ;;  %p3244_p8 = scmp.lt.s32.totalorder %s3238_s7, %s3238_s7 }
  0x32   :  { %p3245_p9 = por %p3244_p8, %p3243_p7 }
  0x34   :  { %p3246_p10 = pnand %p3245_p9, %p3239_p6 }
  0x36   :  { %3249 = shalt.err (!%p3246_p10)
}
  0x37   :  { %59 = dma.hbm_to_vmem [thread:$0]  %s3901_s4, 256, %s54_s30, [#allocation7], %s3322_s14, %s3322_s14, %s3323_s15  }
  0x38   :  { %s3258_s1 = scalar_lea.vmem %s78_s11, 256  ;;  %p3263_p12 = scmp.lt.s32.totalorder %s78_s11, %s78_s11 }
  0x39   :  { %p3259_p11 = scmp.ne.s32.totalorder %s78_s11, %s3258_s1  ;;  %p3264_p13 = scmp.lt.s32.totalorder %s3258_s1, %s3258_s1 }
  0x3b   :  { %p3265_p0 = por %p3264_p13, %p3263_p12 }
  0x3d   :  { %p3266_p1 = pnand %p3265_p0, %p3259_p11 }
  0x3f   :  { %3269 = shalt.err (!%p3266_p1)
}
  0x40   :  { %83 = dma.hbm_to_vmem [thread:$0]  %s3903_s6, 256, %s78_s11, [#allocation10], %s3322_s14, %s3322_s14, %s3323_s15  }
  0x41   :  { %s3328_s18 = smov [#allocation14]  }
  0x42   :  { %s101_s19 = sshll.u32 %s3328_s18, 4  ;;  %s102_s19 = int_to_ptr.vmem [resolvable:$true] %s101_s19 }
  0x43   :  { %s3278_s20 = scalar_lea.vmem %s102_s19, 512  ;;  %p3283_p3 = scmp.lt.s32.totalorder %s102_s19, %s102_s19 }
  0x44   :  { %p3279_p2 = scmp.ne.s32.totalorder %s102_s19, %s3278_s20  ;;  %p3284_p4 = scmp.lt.s32.totalorder %s3278_s20, %s3278_s20 }
  0x46   :  { %p3285_p5 = por %p3284_p4, %p3283_p3 }
  0x48   :  { %p3286_p6 = pnand %p3285_p5, %p3279_p2 }
  0x4a   :  { %3289 = shalt.err (!%p3286_p6)
}
  0x4b   :  { %107 = dma.hbm_to_vmem [thread:$0]  %s3905_s8, 512, %s102_s19, [#allocation13], %s3322_s14, %s3322_s14, %s3323_s15  }
  0x4c   :  { %3310 = dma.done.wait [#allocation4], 256  }
  0x4d   :  { %3311 = vsyncadd [#allocation4], 4294967040 }
  0x4e   :  { %3312 = dma.done.wait [#allocation7], 512  }
  0x4f   :  { %3313 = vsyncadd [#allocation7], 4294966784 }
  0x50   :  { %3314 = dma.done.wait [#allocation10], 512  }
  0x51   :  { %3315 = vsyncadd [#allocation10], 4294966784 }
  0x52   :  { %3316 = dma.done.wait [#allocation13], 768  }
  0x53   :  { %3317 = vsyncadd [#allocation13], 4294966528  ;;  %vm135_vm0 = vcmask 261120   ;;  %v134_v0 = vld [vmem:[%s3899_s2 + $0x18] sm:$0xff]  ;;  %v133_v1 = vld [vmem:[%s3899_s2 + $0x10] sm:$0xff]  ;;  %s3329_s25 = smov 32  }
  0x54   :  { %2900 = vmatprep.subr.mxu0 %v134_v0  ;;  %v129_v2 = vld [vmem:[#allocation3] sm:$0xff]  ;;  %v132_v3 = vld [vmem:[%s3899_s2 + $0x8] sm:$0xff]  ;;  %s3330_s27 = smov 48   ;;  %v3451_v8 = vld [vmem:[#allocation6] sm:$0xff]  ;;  %s3332_s28 = smov 112   ;;  %v3336_v50 = vmov 0.0  }
  0x55   :  { %2901 = vmatpush3.msra.mxu0 %v134_v0  ;;  %2908 = vmatprep.mubr.msk.f32.mxu0 %vm135_vm0, %v129_v2  ;;  %v219_v4 = vld [vmem:[#allocation8] sm:$0xff]  ;;  %v220_v6 = vld [vmem:[#allocation8 + $0x8] sm:$0xff]  ;;  %v3455_v9 = vld [vmem:[#allocation6 + $0x8] sm:$0xff]  ;;  %s3333_s29 = smov 124   ;;  %s3334_s30 = smov 116   ;;  %vm3337_vm1 = vmmov 0  }
  0x56   :  { %2902 = vmatprep.subr.mxu0 %v133_v1  ;;  %299 = vrot.lane.b32.xlu0 %v219_v4, %s3329_s25  ;;  %v131_v5 = vld [vmem:[%s3899_s2] sm:$0xff]  ;;  %v130_v7 = vld [vmem:[#allocation3 + $0x8] sm:$0xff]  ;;  %s3331_s2 = smov 16   ;;  %s3335_s10 = smov 120   ;;  %vm421_vm2 = vcmask 31744   ;;  %vm1636_vm3 = vcmask 64512  }
  0x57   :  { %2903 = vmatpush3.msra.mxu0 %v133_v1  ;;  %273 = vrot.lane.b32.xlu1 %v219_v4, %s3330_s27  ;;  %s3338_s11 = smov 96   ;;  %s3339_s7 = smov 104   ;;  %vm2452_vm4 = vcmask 130048   ;;  %vm2454_vm5 = vcmask 195584  }
  0x58   :  { %2904 = vmatprep.subr.mxu0 %v132_v3  ;;  %2911 = vmatprep.subr.mxu1 %v3336_v50  ;;  %s3340_s12 = smov 64   ;;  %s3343_s16 = smov [#allocation15]  }
  0x59   :  { %2905 = vmatpush3.msra.mxu0 %v132_v3  ;;  %2913 = vmatprep.mubr.msk.f32.mxu1 %vm3337_vm1, %v3336_v50  ;;  %s2769_s17 = sshll.u32 %s3343_s16, 4  ;;  %s2770_s17 = int_to_ptr.vmem [resolvable:$true] %s2769_s17 }
  0x5a   :  { %2906 = vmatprep.subr.mxu0 %v131_v5  ;;  %301 = vrot.lane.b32.xlu0 %v220_v6, %s3329_s25  ;;  %s3290_s18 = scalar_lea.vmem %s2770_s17, 256  ;;  %p3295_p8 = scmp.lt.s32.totalorder %s2770_s17, %s2770_s17 }
  0x5b   :  { %2907 = vmatpush3.msra.mxu0 %v131_v5  ;;  %275 = vrot.lane.b32.xlu1 %v220_v6, %s3330_s27  ;;  %p3291_p7 = scmp.ne.s32.totalorder %s2770_s17, %s3290_s18  ;;  %p3296_p9 = scmp.lt.s32.totalorder %s3290_s18, %s3290_s18 }
  0x5c   :  { %2909 = vmatmul.mubr.msk.f32.vlgmr.msra.gmra.mxu0 %vm135_vm0, %v130_v7  ;;  %2931 = vmatprep.subr.mxu0 %v3336_v50 }
  0x5d   :  { %2933 = vmatprep.mubr.msk.f32.mxu0 %vm3337_vm1, %v3336_v50  ;;  %p3297_p10 = por %p3296_p9, %p3295_p8 }
  0x5e   :  { %291 = vrot.lane.b32.xlu0 %v3451_v8, %s3330_s27 }
  0x5f   :  { %p3298_p11 = pnand %p3297_p10, %p3291_p7 }
  0x62   :  { %293 = vrot.lane.b32.xlu0 %v3455_v9, %s3330_s27 }
  0x66   :  { %265 = vrot.lane.b32.xlu0 %v3451_v8, %s3329_s25 }
  0x6a   :  { %225 = vrot.lane.b32.xlu0 %v219_v4, %s3331_s2 }
  0xc8   :  { %v300_v12 = vpop.permute.xlu0 %299 }
  0xc9   :  { %v274_v10 = vpop.permute.xlu1 %273 }
  0xcc   :  { %v302_v17 = vpop.permute.xlu0 %301 }
  0xcd   :  { %v276_v11 = vpop.permute.xlu1 %275 }
  0xd0   :  { %v292_v21 = vpop.permute.xlu0 %291 }
  0xd4   :  { %v294_v22 = vpop.permute.xlu0 %293 }
  0xd8   :  { %v266_v27 = vpop.permute.xlu0 %265 }
  0xdc   :  { %v226_v31 = vpop.permute.xlu0 %225 }
 0x11c   :  { %v3461_v13 = vpop.f32.mrf.mxu0 }
 0x11d   :  { %v280_v14 = vmul.f32 %v3461_v13, %v276_v11  ;;  %v306_v18 = vmul.f32 %v3461_v13, %v302_v17  ;;  %v298_v26 = vmul.f32 %v3461_v13, %v294_v22  ;;  %v254_v34 = vmul.f32 %v3461_v13, %v220_v6 }
 0x11e   :  { %v3464_v15 = vpop.f32.mrf.mxu0  ;;  %v222_v62 = vmul.f32 %v3461_v13, %v3455_v9 }
 0x11f   :  { %285 = vrot.lane.b32.xlu0 %v280_v14, %s3332_s28  ;;  %v305_v16 = vmul.f32 %v300_v12, %v3464_v15  ;;  %v253_v19 = vmul.f32 %v219_v4, %v3464_v15  ;;  %v279_v20 = vmul.f32 %v274_v10, %v3464_v15  ;;  %v297_v23 = vmul.f32 %v292_v21, %v3464_v15 }
 0x120   :  { %v271_v37 = vmul.f32 %v266_v27, %v3464_v15  ;;  %v231_v38 = vmul.f32 %v226_v31, %v3464_v15  ;;  %v221_v58 = vmul.f32 %v3451_v8, %v3464_v15 }
 0x121   :  { %309 = vrot.lane.b32.xlu1 %v305_v16, %s3331_s2 }
 0x123   :  { %245 = vrot.lane.b32.xlu0 %v3451_v8, %s3331_s2 }
 0x125   :  { %311 = vrot.lane.b32.xlu1 %v306_v18, %s3331_s2 }
 0x127   :  { %257 = vrot.lane.b32.xlu0 %v253_v19, %s3331_s2 }
 0x129   :  { %283 = vrot.lane.b32.xlu1 %v279_v20, %s3332_s28 }
 0x12d   :  { %267 = vrot.lane.b32.xlu1 %v3455_v9, %s3329_s25 }
 0x131   :  { %227 = vrot.lane.b32.xlu1 %v220_v6, %s3331_s2 }
 0x191   :  { %v286_v35 = vpop.permute.xlu0 %285 }
 0x193   :  { %v310_v24 = vpop.permute.xlu1 %309 }
 0x194   :  { %v315_v25 = vadd.f32 %v310_v24, %v297_v23 }
 0x195   :  { %v246_v42 = vpop.permute.xlu0 %245 }
 0x196   :  { %376 = vrot.lane.b32.xlu1 %v315_v25, %s3333_s29  ;;  %380 = vrot.lane.b32.xlu0 %v315_v25, %s3334_s30  ;;  %v251_v44 = vmul.f32 %v246_v42, %v3464_v15 }
 0x197   :  { %v312_v28 = vpop.permute.xlu1 %311 }
 0x198   :  { %v316_v29 = vadd.f32 %v312_v28, %v298_v26 }
 0x199   :  { %v258_v43 = vpop.permute.xlu0 %257 }
 0x19a   :  { %378 = vrot.lane.b32.xlu1 %v315_v25, %s3335_s10  ;;  %383 = vrot.lane.b32.xlu0 %v316_v29, %s3333_s29  ;;  %v263_v45 = vadd.f32 %v258_v43, %v251_v44 }
 0x19b   :  { %v284_v30 = vpop.permute.xlu1 %283 }
 0x19c   :  { %v289_v40 = vsub.f32 %v271_v37, %v284_v30 }
 0x19e   :  { %247 = vrot.lane.b32.xlu1 %v3455_v9, %s3331_s2  ;;  %385 = vrot.lane.b32.xlu0 %v316_v29, %s3335_s10 }
 0x19f   :  { %v268_v32 = vpop.permute.xlu1 %267 }
 0x1a0   :  { %v272_v33 = vmul.f32 %v3461_v13, %v268_v32 }
 0x1a2   :  { %v290_v36 = vsub.f32 %v272_v33, %v286_v35  ;;  %259 = vrot.lane.b32.xlu1 %v254_v34, %s3331_s2 }
 0x1a3   :  { %v228_v39 = vpop.permute.xlu1 %227 }
 0x1a4   :  { %369 = vrot.lane.b32.xlu0 %v290_v36, %s3333_s29  ;;  %v232_v41 = vmul.f32 %v3461_v13, %v228_v39 }
 0x1a6   :  { %387 = vrot.lane.b32.xlu1 %v316_v29, %s3334_s30 }
 0x1a8   :  { %371 = vrot.lane.b32.xlu0 %v290_v36, %s3335_s10 }
 0x1aa   :  { %235 = vrot.lane.b32.xlu1 %v231_v38, %s3332_s28 }
 0x1ac   :  { %362 = vrot.lane.b32.xlu0 %v289_v40, %s3333_s29 }
 0x1ae   :  { %237 = vrot.lane.b32.xlu1 %v232_v41, %s3332_s28 }
 0x1b0   :  { %364 = vrot.lane.b32.xlu0 %v289_v40, %s3335_s10 }
 0x1b2   :  { %373 = vrot.lane.b32.xlu1 %v290_v36, %s3334_s30 }
 0x1b4   :  { %389 = vrot.lane.b32.xlu0 %v315_v25, %s3332_s28 }
 0x1b6   :  { %366 = vrot.lane.b32.xlu1 %v289_v40, %s3334_s30 }
 0x1b8   :  { %332 = vrot.lane.b32.xlu0 %v263_v45, %s3333_s29 }
 0x1ba   :  { %397 = vrot.lane.b32.xlu1 %v316_v29, %s3332_s28 }
 0x1bc   :  { %336 = vrot.lane.b32.xlu0 %v263_v45, %s3334_s30 }
 0x1be   :  { %334 = vrot.lane.b32.xlu1 %v263_v45, %s3335_s10 }
 0x208   :  { %v377_v46 = vpop.permute.xlu1 %376  ;;  %v381_v47 = vpop.permute.xlu0 %380 }
 0x209   :  { %391 = vrot.lane.b32.xlu1 %v377_v46, %s3332_s28 }
 0x20c   :  { %v379_v48 = vpop.permute.xlu1 %378  ;;  %v384_v49 = vpop.permute.xlu0 %383 }
 0x20d   :  { %399 = vrot.lane.b32.xlu0 %v384_v49, %s3332_s28  ;;  %393 = vrot.lane.b32.xlu1 %v379_v48, %s3332_s28 }
 0x210   :  { %v248_v51 = vpop.permute.xlu1 %247  ;;  %v386_v53 = vpop.permute.xlu0 %385 }
 0x211   :  { %395 = vrot.lane.b32.xlu0 %v381_v47, %s3332_s28  ;;  %v252_v52 = vmul.f32 %v3461_v13, %v248_v51 }
 0x214   :  { %v260_v54 = vpop.permute.xlu1 %259 }
 0x215   :  { %v264_v55 = vadd.f32 %v260_v54, %v252_v52  ;;  %401 = vrot.lane.b32.xlu0 %v386_v53, %s3332_s28 }
 0x216   :  { %v370_v59 = vpop.permute.xlu0 %369 }
 0x217   :  { %339 = vrot.lane.b32.xlu1 %v264_v55, %s3333_s29 }
 0x218   :  { %v388_v56 = vpop.permute.xlu1 %387 }
 0x219   :  { %341 = vrot.lane.b32.xlu0 %v264_v55, %s3335_s10 }
 0x21a   :  { %v372_v63 = vpop.permute.xlu0 %371 }
 0x21b   :  { %403 = vrot.lane.b32.xlu1 %v388_v56, %s3332_s28 }
 0x21c   :  { %v236_v57 = vpop.permute.xlu1 %235 }
 0x21d   :  { %419 = vrot.lane.b32.xlu0 %v289_v40, %s3338_s11  ;;  %v241_v60 = vsub.f32 %v221_v58, %v236_v57 }
 0x21e   :  { %v363_v1 = vpop.permute.xlu0 %362 }
 0x21f   :  { %343 = vrot.lane.b32.xlu1 %v264_v55, %s3334_s30 }
 0x220   :  { %v238_v61 = vpop.permute.xlu1 %237 }
 0x221   :  { %318 = vrot.lane.b32.xlu0 %v241_v60, %s3333_s29  ;;  %v242_v0 = vsub.f32 %v222_v62, %v238_v61 }
 0x222   :  { %v365_v3 = vpop.permute.xlu0 %364 }
 0x223   :  { %724 = vrot.lane.b32.xlu1 %v290_v36, %s3338_s11 }
 0x224   :  { %v374_v2 = vpop.permute.xlu1 %373 }
 0x225   :  { %320 = vrot.lane.b32.xlu0 %v241_v60, %s3335_s10 }
 0x226   :  { %v390_v4 = vpop.permute.xlu0 %389 }
 0x227   :  { %325 = vrot.lane.b32.xlu1 %v242_v0, %s3333_s29 }
 0x228   :  { %v367_v5 = vpop.permute.xlu1 %366 }
 0x229   :  { %322 = vrot.lane.b32.xlu0 %v241_v60, %s3334_s30 }
 0x22a   :  { %v333_v6 = vpop.permute.xlu0 %332 }
 0x22b   :  { %952 = vrot.lane.b32.xlu1 %v374_v2, %s3338_s11 }
 0x22c   :  { %v398_v7 = vpop.permute.xlu1 %397 }
 0x22d   :  { %800 = vrot.lane.b32.xlu0 %v370_v59, %s3338_s11 }
 0x22e   :  { %v337_v8 = vpop.permute.xlu0 %336 }
 0x22f   :  { %329 = vrot.lane.b32.xlu1 %v242_v0, %s3334_s30 }
 0x230   :  { %v335_v9 = vpop.permute.xlu1 %334 }
 0x231   :  { %876 = vrot.lane.b32.xlu0 %v372_v63, %s3338_s11 }
 0x233   :  { %496 = vrot.lane.b32.xlu1 %v363_v1, %s3338_s11 }
 0x235   :  { %327 = vrot.lane.b32.xlu0 %v242_v0, %s3335_s10 }
 0x237   :  { %572 = vrot.lane.b32.xlu1 %v365_v3, %s3338_s11 }
 0x239   :  { %345 = vrot.lane.b32.xlu0 %v263_v45, %s3332_s28 }
 0x23b   :  { %648 = vrot.lane.b32.xlu1 %v367_v5, %s3338_s11 }
 0x23d   :  { %1332 = vrot.lane.b32.xlu0 %v398_v7, %s3338_s11 }
 0x23f   :  { %347 = vrot.lane.b32.xlu1 %v333_v6, %s3332_s28 }
 0x241   :  { %1028 = vrot.lane.b32.xlu0 %v390_v4, %s3338_s11 }
 0x243   :  { %351 = vrot.lane.b32.xlu1 %v337_v8, %s3332_s28 }
 0x245   :  { %349 = vrot.lane.b32.xlu0 %v335_v9, %s3332_s28 }
 0x27b   :  { %v392_v10 = vpop.permute.xlu1 %391 }
 0x27f   :  { %v400_v11 = vpop.permute.xlu0 %399  ;;  %v394_v12 = vpop.permute.xlu1 %393 }
 0x280   :  { %1408 = vrot.lane.b32.xlu1 %v400_v11, %s3338_s11  ;;  %1180 = vrot.lane.b32.xlu0 %v394_v12, %s3338_s11 }
 0x283   :  { %v396_v14 = vpop.permute.xlu0 %395 }
 0x284   :  { %1104 = vrot.lane.b32.xlu1 %v392_v10, %s3338_s11  ;;  %353 = vrot.lane.b32.xlu0 %v264_v55, %s3332_s28 }
 0x287   :  { %v402_v16 = vpop.permute.xlu0 %401 }
 0x288   :  { %1256 = vrot.lane.b32.xlu1 %v396_v14, %s3338_s11  ;;  %1484 = vrot.lane.b32.xlu0 %v402_v16, %s3338_s11 }
 0x289   :  { %v340_v17 = vpop.permute.xlu1 %339 }
 0x28b   :  { %v342_v18 = vpop.permute.xlu0 %341 }
 0x28c   :  { %355 = vrot.lane.b32.xlu1 %v340_v17, %s3332_s28  ;;  %357 = vrot.lane.b32.xlu0 %v342_v18, %s3332_s28 }
 0x28d   :  { %v404_v19 = vpop.permute.xlu1 %403 }
 0x28f   :  { %v420_v20 = vpop.permute.xlu0 %419 }
 0x290   :  { %2912 = vmatpush3.xpose.msk.msra.mxu1 %vm421_vm2, %v420_v20  ;;  %1560 = vrot.lane.b32.xlu1 %v404_v19, %s3338_s11 }
 0x291   :  { %408 = vrot.lane.b32.xlu0 %v3464_v15, %s3332_s28  ;;  %v344_v21 = vpop.permute.xlu1 %343  ;;  %2916 = vmatprep.subr.mxu1 %v3336_v50 }
 0x293   :  { %v319_v22 = vpop.permute.xlu0 %318  ;;  %2914 = vmatmul.mubr.msk.f32.vlgmr.msra.gmra.mxu1 %vm421_vm2, %v241_v60 }
 0x294   :  { %359 = vrot.lane.b32.xlu1 %v344_v21, %s3332_s28  ;;  %2918 = vmatprep.mubr.msk.f32.mxu1 %vm3337_vm1, %v3336_v50 }
 0x295   :  { %415 = vrot.lane.b32.xlu0 %v3461_v13, %s3332_s28  ;;  %v725_v23 = vpop.permute.xlu1 %724 }
 0x296   :  { %2932 = vmatpush3.xpose.msk.msra.mxu0 %vm421_vm2, %v725_v23 }
 0x297   :  { %v321_v24 = vpop.permute.xlu0 %320  ;;  %2941 = vmatprep.subr.mxu0 %v3336_v50 }
 0x298   :  { %406 = vrot.lane.b32.xlu1 %v3464_v15, %s3335_s10 }
 0x299   :  { %2934 = vmatmul.mubr.msk.f32.vlgmr.msra.gmra.mxu0 %vm421_vm2, %v242_v0  ;;  %v326_v25 = vpop.permute.xlu1 %325 }
 0x29a   :  { %2943 = vmatprep.mubr.msk.f32.mxu0 %vm3337_vm1, %v3336_v50 }
 0x29b   :  { %v323_v26 = vpop.permute.xlu0 %322 }
 0x29c   :  { %410 = vrot.lane.b32.xlu1 %v3464_v15, %s3339_s7 }
 0x29d   :  { %v953_v27 = vpop.permute.xlu1 %952 }
 0x29f   :  { %v801_v28 = vpop.permute.xlu0 %800 }
 0x2a0   :  { %413 = vrot.lane.b32.xlu1 %v3461_v13, %s3335_s10 }
 0x2a1   :  { %v330_v29 = vpop.permute.xlu1 %329 }
 0x2a3   :  { %v877_v30 = vpop.permute.xlu0 %876 }
 0x2a4   :  { %417 = vrot.lane.b32.xlu1 %v3461_v13, %s3339_s7  ;;  %2942 = vmatpush3.xpose.msk.msra.mxu0 %vm421_vm2, %v877_v30 }
 0x2a5   :  { %v497_v31 = vpop.permute.xlu1 %496  ;;  %2951 = vmatprep.subr.mxu0 %v3336_v50 }
 0x2a6   :  { %2917 = vmatpush3.xpose.msk.msra.mxu1 %vm421_vm2, %v497_v31 }
 0x2a7   :  { %v328_v32 = vpop.permute.xlu0 %327  ;;  %2921 = vmatprep.subr.mxu1 %v3336_v50 }
 0x2a8   :  { %2944 = vmatmul.mubr.msk.f32.vlgmr.msra.gmra.mxu0 %vm421_vm2, %v328_v32 }
 0x2a9   :  { %v573_v33 = vpop.permute.xlu1 %572  ;;  %2919 = vmatmul.mubr.msk.f32.vlgmr.msra.gmra.mxu1 %vm421_vm2, %v319_v22  ;;  %2953 = vmatprep.mubr.msk.f32.mxu0 %vm3337_vm1, %v3336_v50 }
 0x2aa   :  { %2922 = vmatpush3.xpose.msk.msra.mxu1 %vm421_vm2, %v573_v33  ;;  %2923 = vmatprep.mubr.msk.f32.mxu1 %vm3337_vm1, %v3336_v50 }
 0x2ab   :  { %v346_v34 = vpop.permute.xlu0 %345  ;;  %2926 = vmatprep.subr.mxu1 %v3336_v50 }
 0x2ad   :  { %v649_v35 = vpop.permute.xlu1 %648  ;;  %2924 = vmatmul.mubr.msk.f32.vlgmr.msra.gmra.mxu1 %vm421_vm2, %v321_v24 }
 0x2ae   :  { %2927 = vmatpush3.xpose.msk.msra.mxu1 %vm421_vm2, %v649_v35  ;;  %2928 = vmatprep.mubr.msk.f32.mxu1 %vm3337_vm1, %v3336_v50 }
 0x2af   :  { %v1333_v36 = vpop.permute.xlu0 %1332  ;;  %2936 = vmatprep.subr.mxu1 %v3336_v50 }
 0x2b1   :  { %2929 = vmatmul.mubr.msk.f32.vlgmr.msra.gmra.mxu1 %vm421_vm2, %v323_v26  ;;  %v348_v38 = vpop.permute.xlu1 %347 }
 0x2b2   :  { %2937 = vmatpush3.xpose.msk.msra.mxu1 %vm421_vm2, %v801_v28  ;;  %2938 = vmatprep.mubr.msk.f32.mxu1 %vm3337_vm1, %v3336_v50 }
 0x2b3   :  { %v1029_v37 = vpop.permute.xlu0 %1028  ;;  %2946 = vmatprep.subr.mxu1 %v3336_v50 }
 0x2b4   :  { %2952 = vmatpush3.xpose.msk.msra.mxu0 %vm421_vm2, %v1029_v37 }
 0x2b5   :  { %2939 = vmatmul.mubr.msk.f32.vlgmr.msra.gmra.mxu1 %vm421_vm2, %v326_v25  ;;  %2961 = vmatprep.subr.mxu0 %v3336_v50  ;;  %v352_v39 = vpop.permute.xlu1 %351 }
 0x2b6   :  { %2947 = vmatpush3.xpose.msk.msra.mxu1 %vm421_vm2, %v953_v27  ;;  %2948 = vmatprep.mubr.msk.f32.mxu1 %vm3337_vm1, %v3336_v50 }
 0x2b7   :  { %2954 = vmatmul.mubr.msk.f32.vlgmr.msra.gmra.mxu0 %vm421_vm2, %v346_v34  ;;  %2956 = vmatprep.subr.mxu1 %v3336_v50  ;;  %v350_v40 = vpop.permute.xlu0 %349 }
 0x2b8   :  { %2963 = vmatprep.mubr.msk.f32.mxu0 %vm3337_vm1, %v3336_v50 }
 0x2b9   :  { %2949 = vmatmul.mubr.msk.f32.vlgmr.msra.gmra.mxu1 %vm421_vm2, %v330_v29 }
 0x2ba   :  { %2958 = vmatprep.mubr.msk.f32.mxu1 %vm3337_vm1, %v3336_v50 }
 0x2f2   :  { %v1409_v41 = vpop.permute.xlu1 %1408  ;;  %v1181_v42 = vpop.permute.xlu0 %1180 }
 0x2f3   :  { %2962 = vmatpush3.xpose.msk.msra.mxu0 %vm421_vm2, %v1181_v42 }
 0x2f4   :  { %2971 = vmatprep.subr.mxu0 %v3336_v50 }
 0x2f6   :  { %v1105_v43 = vpop.permute.xlu1 %1104  ;;  %2964 = vmatmul.mubr.msk.f32.vlgmr.msra.gmra.mxu0 %vm421_vm2, %v350_v40  ;;  %v354_v44 = vpop.permute.xlu0 %353 }
 0x2f7   :  { %2957 = vmatpush3.xpose.msk.msra.mxu1 %vm421_vm2, %v1105_v43  ;;  %2972 = vmatpush3.xpose.msk.msra.mxu0 %vm421_vm2, %v1333_v36 }
 0x2f8   :  { %2973 = vmatprep.mubr.msk.f32.mxu0 %vm3337_vm1, %v3336_v50  ;;  %2981 = vmatprep.subr.mxu0 %v3336_v50 }
 0x2f9   :  { %2966 = vmatprep.subr.mxu1 %v3336_v50 }
 0x2fa   :  { %v1257_v45 = vpop.permute.xlu1 %1256  ;;  %2974 = vmatmul.mubr.msk.f32.vlgmr.msra.gmra.mxu0 %vm421_vm2, %v354_v44  ;;  %v1485_v46 = vpop.permute.xlu0 %1484  ;;  %2959 = vmatmul.mubr.msk.f32.vlgmr.msra.gmra.mxu1 %vm421_vm2, %v348_v38 }
 0x2fb   :  { %2967 = vmatpush3.xpose.msk.msra.mxu1 %vm421_vm2, %v1257_v45  ;;  %2982 = vmatpush3.xpose.msk.msra.mxu0 %vm421_vm2, %v1485_v46 }
 0x2fc   :  { %2968 = vmatprep.mubr.msk.f32.mxu1 %vm3337_vm1, %v3336_v50  ;;  %2983 = vmatprep.mubr.msk.f32.mxu0 %vm3337_vm1, %v3336_v50 }
 0x2fd   :  { %2976 = vmatprep.subr.mxu1 %v3336_v50  ;;  %2991 = vmatprep.subr.mxu0 %v3336_v50 }
 0x2fe   :  { %v356_v47 = vpop.permute.xlu1 %355  ;;  %v358_v48 = vpop.permute.xlu0 %357  ;;  %2969 = vmatmul.mubr.msk.f32.vlgmr.msra.gmra.mxu1 %vm421_vm2, %v352_v39 }
 0x2ff   :  { %2977 = vmatpush3.xpose.msk.msra.mxu1 %vm421_vm2, %v1409_v41  ;;  %2984 = vmatmul.mubr.msk.f32.vlgmr.msra.gmra.mxu0 %vm421_vm2, %v358_v48 }
 0x300   :  { %2978 = vmatprep.mubr.msk.f32.mxu1 %vm3337_vm1, %v3336_v50  ;;  %2986 = vmatprep.subr.mxu1 %v3336_v50 }
 0x301   :  { %2993 = vmatprep.mubr.msk.f32.mxu0 %vm3337_vm1, %v3336_v50 }
 0x302   :  { %v1561_v49 = vpop.permute.xlu1 %1560  ;;  %2979 = vmatmul.mubr.msk.f32.vlgmr.msra.gmra.mxu1 %vm421_vm2, %v356_v47 }
 0x303   :  { %2987 = vmatpush3.xpose.msk.msra.mxu1 %vm421_vm2, %v1561_v49  ;;  %2988 = vmatprep.mubr.msk.f32.mxu1 %vm3337_vm1, %v3336_v50  ;;  %v409_v39 = vpop.permute.xlu0 %408 }
 0x304   :  { %2996 = vmatprep.subr.mxu1 %v3336_v50 }
 0x306   :  { %v360_v51 = vpop.permute.xlu1 %359 }
 0x307   :  { %2989 = vmatmul.mubr.msk.f32.vlgmr.msra.gmra.mxu1 %vm421_vm2, %v360_v51  ;;  %v3714_v41 = vpop.permute.xlu0 %415 }
 0x308   :  { %2998 = vmatprep.mubr.msk.f32.mxu1 %vm3337_vm1, %v3336_v50 }
 0x30a   :  { %v407_v38 = vpop.permute.xlu1 %406 }
 0x30e   :  { %v411_v40 = vpop.permute.xlu1 %410 }
 0x312   :  { %v414_v42 = vpop.permute.xlu1 %413 }
 0x316   :  { %v3717_v45 = vpop.permute.xlu1 %417 }
 0x353   :  { %v3650_v52 = vpop.f32.mrf.mxu1 }
 0x354   :  { %v1637_v53 = vsel %vm1636_vm3, %v3650_v52, -inf }
 0x355   :  { %1638 = vmax.xlane.f32.xlu0 %v1637_v53  ;;  %v2915_v54 = vpop.f32.mrf.mxu1 }
 0x359   :  { %v3654_v55 = vpop.f32.mrf.mxu0 }
 0x35a   :  { %v1649_v56 = vsel %vm1636_vm3, %v3654_v55, -inf }
 0x35b   :  { %1650 = vmax.xlane.f32.xlu1 %v1649_v56  ;;  %v2935_v57 = vpop.f32.mrf.mxu0 }
 0x368   :  { %v3658_v58 = vpop.f32.mrf.mxu0 }
 0x369   :  { %v3660_v59 = vpop.f32.mrf.mxu1  ;;  %v1655_v60 = vsel %vm1636_vm3, %v3658_v58, -inf }
 0x36a   :  { %1656 = vmax.xlane.f32.xlu1 %v1655_v60  ;;  %v2945_v61 = vpop.f32.mrf.mxu0  ;;  %v1640_v62 = vsel %vm1636_vm3, %v3660_v59, -inf }
 0x36b   :  { %1641 = vmax.xlane.f32.xlu0 %v1640_v62  ;;  %v2920_v63 = vpop.f32.mrf.mxu1 }
 0x36d   :  { %v3666_v0 = vpop.f32.mrf.mxu1 }
 0x36e   :  { %v1643_v1 = vsel %vm1636_vm3, %v3666_v0, -inf }
 0x36f   :  { %1644 = vmax.xlane.f32.xlu1 %v1643_v1  ;;  %v2925_v2 = vpop.f32.mrf.mxu1 }
 0x371   :  { %v3670_v3 = vpop.f32.mrf.mxu1 }
 0x372   :  { %v1646_v12 = vsel %vm1636_vm3, %v3670_v3, -inf }
 0x373   :  { %v2930_v4 = vpop.f32.mrf.mxu1 }
 0x375   :  { %v3672_v5 = vpop.f32.mrf.mxu1 }
 0x376   :  { %v1652_v14 = vsel %vm1636_vm3, %v3672_v5, -inf }
 0x377   :  { %v2940_v6 = vpop.f32.mrf.mxu1  ;;  %v3674_v7 = vpop.f32.mrf.mxu0 }
 0x378   :  { %v1661_v8 = vsel %vm1636_vm3, %v3674_v7, -inf }
 0x379   :  { %v2955_v9 = vpop.f32.mrf.mxu0  ;;  %1662 = vmax.xlane.f32.xlu0 %v1661_v8  ;;  %v3678_v10 = vpop.f32.mrf.mxu1 }
 0x37a   :  { %v1658_v16 = vsel %vm1636_vm3, %v3678_v10, -inf }
 0x37b   :  { %v2950_v11 = vpop.f32.mrf.mxu1 }
 0x37d   :  { %1647 = vmax.xlane.f32.xlu0 %v1646_v12 }
 0x381   :  { %1653 = vmax.xlane.f32.xlu0 %v1652_v14 }
 0x385   :  { %1659 = vmax.xlane.f32.xlu0 %v1658_v16 }
 0x3b6   :  { %v3686_v17 = vpop.f32.mrf.mxu0 }
 0x3b7   :  { %v1667_v26 = vsel %vm1636_vm3, %v3686_v17, -inf }
 0x3b8   :  { %v2965_v18 = vpop.f32.mrf.mxu0 }
 0x3ba   :  { %v3688_v19 = vpop.f32.mrf.mxu1  ;;  %v3690_v20 = vpop.f32.mrf.mxu0 }
 0x3bb   :  { %v1664_v21 = vsel %vm1636_vm3, %v3688_v19, -inf  ;;  %v1673_v31 = vsel %vm1636_vm3, %v3690_v20, -inf }
 0x3bc   :  { %v2975_v22 = vpop.f32.mrf.mxu0  ;;  %1665 = vmax.xlane.f32.xlu1 %v1664_v21  ;;  %v2960_v23 = vpop.f32.mrf.mxu1 }
 0x3be   :  { %v3694_v24 = vpop.f32.mrf.mxu1 }
 0x3bf   :  { %v3696_v25 = vpop.f32.mrf.mxu0  ;;  %v1670_v27 = vsel %vm1636_vm3, %v3694_v24, -inf }
 0x3c0   :  { %1668 = vmax.xlane.f32.xlu1 %v1667_v26  ;;  %1671 = vmax.xlane.f32.xlu0 %v1670_v27  ;;  %v2970_v28 = vpop.f32.mrf.mxu1  ;;  %v1679_v35 = vsel %vm1636_vm3, %v3696_v25, -inf }
 0x3c1   :  { %v2985_v29 = vpop.f32.mrf.mxu0 }
 0x3c2   :  { %v3702_v30 = vpop.f32.mrf.mxu1 }
 0x3c3   :  { %v1676_v32 = vsel %vm1636_vm3, %v3702_v30, -inf }
 0x3c4   :  { %1674 = vmax.xlane.f32.xlu1 %v1673_v31  ;;  %1677 = vmax.xlane.f32.xlu0 %v1676_v32  ;;  %v2980_v33 = vpop.f32.mrf.mxu1 }
 0x3c7   :  { %v3708_v34 = vpop.f32.mrf.mxu1 }
 0x3c8   :  { %1680 = vmax.xlane.f32.xlu1 %v1679_v35  ;;  %v1682_v36 = vsel %vm1636_vm3, %v3708_v34, -inf }
 0x3c9   :  { %1683 = vmax.xlane.f32.xlu0 %v1682_v36  ;;  %v2990_v37 = vpop.f32.mrf.mxu1 }
 0x3de   :  { %v1639_v43 = vpop.xlane.xlu0 %1638 }
 0x3df   :  { %v1685_v44 = vsub.f32 %v3650_v52, %v1639_v43 }
 0x3e1   :  { %v1701_v46 = vmul.f32 1.442695, %v1685_v44 }
 0x3e3   :  { %3082 = vpow2.f32 %v1701_v46 }
 0x3e4   :  { %v1651_v47 = vpop.xlane.xlu1 %1650 }
 0x3e5   :  { %v1689_v48 = vsub.f32 %v3654_v55, %v1651_v47 }
 0x3e7   :  { %v1709_v49 = vmul.f32 1.442695, %v1689_v48 }
 0x3e9   :  { %3084 = vpow2.f32 %v1709_v49 }
 0x3f0   :  { %v3720_v51 = vpop.eup %3082 }
 0x3f1   :  { %v1733_v53 = vsel %vm1636_vm3, %v3720_v51, 0.0 }
 0x3f2   :  { %1734 = vadd.xlane.f32.xlu0 %v1733_v53 }
 0x3f3   :  { %v1657_v2 = vpop.xlane.xlu1 %1656 }
 0x3f4   :  { %v1642_v56 = vpop.xlane.xlu0 %1641  ;;  %v1691_v8 = vsub.f32 %v3658_v58, %v1657_v2 }
 0x3f5   :  { %v1686_v57 = vsub.f32 %v3660_v59, %v1642_v56 }
 0x3f6   :  { %v3724_v54 = vpop.eup %3084  ;;  %v1713_v12 = vmul.f32 1.442695, %v1691_v8 }
 0x3f7   :  { %v1745_v52 = vsel %vm1636_vm3, %v3724_v54, 0.0  ;;  %v1703_v61 = vmul.f32 1.442695, %v1686_v57 }
 0x3f8   :  { %1746 = vadd.xlane.f32.xlu1 %v1745_v52  ;;  %v1645_v59 = vpop.xlane.xlu1 %1644 }
 0x3f9   :  { %3086 = vpow2.f32 %v1703_v61 }
 0x402   :  { %v1663_v55 = vpop.xlane.xlu0 %1662 }
 0x403   :  { %v1693_v62 = vsub.f32 %v3674_v7, %v1663_v55  ;;  %v1687_v7 = vsub.f32 %v3666_v0, %v1645_v59 }
 0x405   :  { %v1717_v1 = vmul.f32 1.442695, %v1693_v62 }
 0x406   :  { %v1648_v60 = vpop.xlane.xlu0 %1647  ;;  %v3743_v16 = vpop.eup %3086 }
 0x407   :  { %3088 = vpow2.f32 %v1717_v1 }
 0x408   :  { %1907 = vrot.lane.b32.xlu0 %v407_v38, %s3340_s12 }
 0x409   :  { %1831 = vrot.lane.b32.xlu1 %v3464_v15, %s3340_s12  ;;  %v1688_v15 = vsub.f32 %v3670_v3, %v1648_v60  ;;  %v1705_v3 = vmul.f32 1.442695, %v1687_v7 }
 0x40a   :  { %v1654_v63 = vpop.xlane.xlu0 %1653 }
 0x40b   :  { %v1690_v4 = vsub.f32 %v3672_v5, %v1654_v63  ;;  %v1736_v5 = vsel %vm1636_vm3, %v3743_v16, 0.0 }
 0x40c   :  { %2135 = vrot.lane.b32.xlu0 %v3461_v13, %s3340_s12  ;;  %v1707_v13 = vmul.f32 1.442695, %v1688_v15 }
 0x40d   :  { %1983 = vrot.lane.b32.xlu1 %v409_v39, %s3340_s12  ;;  %v1711_v9 = vmul.f32 1.442695, %v1690_v4 }
 0x40e   :  { %v1660_v6 = vpop.xlane.xlu0 %1659  ;;  %3090 = vpow2.f32 %v1707_v13 }
 0x40f   :  { %v1692_v11 = vsub.f32 %v3678_v10, %v1660_v6  ;;  %3092 = vpow2.f32 %v1711_v9 }
 0x410   :  { %3094 = vpow2.f32 %v1713_v12 }
 0x411   :  { %2059 = vrot.lane.b32.xlu1 %v411_v40, %s3340_s12  ;;  %v1715_v14 = vmul.f32 1.442695, %v1692_v11 }
 0x413   :  { %3096 = vpow2.f32 %v1715_v14 }
 0x414   :  { %v3747_v18 = vpop.eup %3088  ;;  %3098 = vpow2.f32 %v1705_v3 }
 0x415   :  { %2211 = vrot.lane.b32.xlu1 %v414_v42, %s3340_s12  ;;  %v1757_v58 = vsel %vm1636_vm3, %v3747_v18, 0.0 }
 0x41b   :  { %v3751_v10 = vpop.eup %3090 }
 0x41c   :  { %v1742_v0 = vsel %vm1636_vm3, %v3751_v10, 0.0  ;;  %v3755_v21 = vpop.eup %3092 }
 0x41d   :  { %v3757_v22 = vpop.eup %3094  ;;  %v1748_v23 = vsel %vm1636_vm3, %v3755_v21, 0.0 }
 0x41e   :  { %v1751_v27 = vsel %vm1636_vm3, %v3757_v22, 0.0 }
 0x420   :  { %v3761_v26 = vpop.eup %3096 }
 0x421   :  { %v3765_v28 = vpop.eup %3098  ;;  %v1754_v29 = vsel %vm1636_vm3, %v3761_v26, 0.0 }
 0x422   :  { %v1739_v31 = vsel %vm1636_vm3, %v3765_v28, 0.0 }
 0x42b   :  { %1737 = vadd.xlane.f32.xlu0 %v1736_v5 }
 0x42f   :  { %1758 = vadd.xlane.f32.xlu0 %v1757_v58 }
 0x433   :  { %1743 = vadd.xlane.f32.xlu0 %v1742_v0 }
 0x437   :  { %1749 = vadd.xlane.f32.xlu0 %v1748_v23 }
 0x439   :  { %1752 = vadd.xlane.f32.xlu1 %v1751_v27 }
 0x43b   :  { %1755 = vadd.xlane.f32.xlu0 %v1754_v29 }
 0x43d   :  { %1740 = vadd.xlane.f32.xlu1 %v1739_v31 }
 0x445   :  { %v1666_v32 = vpop.xlane.xlu1 %1665 }
 0x446   :  { %v1694_v33 = vsub.f32 %v3688_v19, %v1666_v32 }
 0x448   :  { %v1719_v35 = vmul.f32 1.442695, %v1694_v33 }
 0x449   :  { %v1669_v36 = vpop.xlane.xlu1 %1668  ;;  %v1672_v37 = vpop.xlane.xlu0 %1671 }
 0x44a   :  { %3100 = vpow2.f32 %v1719_v35  ;;  %v1695_v38 = vsub.f32 %v3686_v17, %v1669_v36  ;;  %v1696_v39 = vsub.f32 %v3694_v24, %v1672_v37 }
 0x44c   :  { %v1721_v40 = vmul.f32 1.442695, %v1695_v38  ;;  %v1723_v42 = vmul.f32 1.442695, %v1696_v39 }
 0x44d   :  { %v1675_v43 = vpop.xlane.xlu1 %1674  ;;  %v1678_v44 = vpop.xlane.xlu0 %1677 }
 0x44e   :  { %3102 = vpow2.f32 %v1721_v40  ;;  %v1697_v46 = vsub.f32 %v3690_v20, %v1675_v43  ;;  %v1698_v47 = vsub.f32 %v3702_v30, %v1678_v44 }
 0x44f   :  { %3104 = vpow2.f32 %v1723_v42 }
 0x450   :  { %v1725_v48 = vmul.f32 1.442695, %v1697_v46  ;;  %v1727_v19 = vmul.f32 1.442695, %v1698_v47 }
 0x451   :  { %v1681_v49 = vpop.xlane.xlu1 %1680 }
 0x452   :  { %3106 = vpow2.f32 %v1725_v48  ;;  %v1699_v53 = vsub.f32 %v3696_v25, %v1681_v49  ;;  %v1684_v52 = vpop.xlane.xlu0 %1683 }
 0x453   :  { %3108 = vpow2.f32 %v1727_v19  ;;  %v1700_v17 = vsub.f32 %v3708_v34, %v1684_v52 }
 0x454   :  { %v1729_v24 = vmul.f32 1.442695, %v1699_v53 }
 0x455   :  { %v1731_v56 = vmul.f32 1.442695, %v1700_v17 }
 0x456   :  { %3110 = vpow2.f32 %v1729_v24 }
 0x457   :  { %v3778_v55 = vpop.eup %3100  ;;  %3112 = vpow2.f32 %v1731_v56 }
 0x458   :  { %v1760_v20 = vsel %vm1636_vm3, %v3778_v55, 0.0 }
 0x459   :  { %1761 = vadd.xlane.f32.xlu1 %v1760_v20 }
 0x45b   :  { %v3782_v30 = vpop.eup %3102 }
 0x45c   :  { %v3784_v57 = vpop.eup %3104  ;;  %v1763_v25 = vsel %vm1636_vm3, %v3782_v30, 0.0 }
 0x45d   :  { %1764 = vadd.xlane.f32.xlu1 %v1763_v25  ;;  %v1766_v34 = vsel %vm1636_vm3, %v3784_v57, 0.0 }
 0x45e   :  { %1767 = vadd.xlane.f32.xlu0 %v1766_v34 }
 0x45f   :  { %v3790_v60 = vpop.eup %3106 }
 0x460   :  { %v3792_v61 = vpop.eup %3108  ;;  %v1769_v62 = vsel %vm1636_vm3, %v3790_v60, 0.0 }
 0x461   :  { %1770 = vadd.xlane.f32.xlu1 %v1769_v62  ;;  %v1772_v63 = vsel %vm1636_vm3, %v3792_v61, 0.0 }
 0x462   :  { %1773 = vadd.xlane.f32.xlu0 %v1772_v63 }
 0x463   :  { %v3798_v1 = vpop.eup %3110 }
 0x464   :  { %v3800_v15 = vpop.eup %3112  ;;  %v1775_v2 = vsel %vm1636_vm3, %v3798_v1, 0.0 }
 0x465   :  { %1776 = vadd.xlane.f32.xlu1 %v1775_v2  ;;  %v1778_v13 = vsel %vm1636_vm3, %v3800_v15, 0.0 }
 0x466   :  { %1779 = vadd.xlane.f32.xlu0 %v1778_v13 }
 0x476   :  { %2363 = vrot.lane.b32.xlu1 %v3717_v45, %s3340_s12 }
 0x47b   :  { %v1735_v4 = vpop.xlane.xlu0 %1734 }
 0x47c   :  { %2287 = vrot.lane.b32.xlu0 %v3714_v41, %s3340_s12  ;;  %3114 = vrcp.f32 %v1735_v4  ;;  %v3817_v41 = vstv %s3897_s0  ;;  %s3341_s0 = smov 24  }
 0x47f   :  { %v1908_v6 = vpop.permute.xlu0 %1907 }
 0x480   :  { %2997 = vmatpush3.msra.mxu1 %v1908_v6 }
 0x481   :  { %v1747_v8 = vpop.xlane.xlu1 %1746  ;;  %3006 = vmatprep.subr.mxu1 %v3336_v50 }
 0x483   :  { %v3812_v9 = vpop.permute.xlu0 %2135 }
 0x485   :  { %v1832_v59 = vpop.permute.xlu1 %1831 }
 0x486   :  { %2992 = vmatpush3.msra.mxu0 %v1832_v59 }
 0x487   :  { %3001 = vmatprep.subr.mxu0 %v3336_v50 }
 0x489   :  { %v3115_v45 = vpop.eup %3114  ;;  %v1984_v3 = vpop.permute.xlu1 %1983 }
 0x48a   :  { %v1797_v5 = vmul.f32 %v3115_v45, %v3720_v51 }
 0x48d   :  { %v2060_v23 = vpop.permute.xlu1 %2059 }
 0x491   :  { %v3826_v27 = vpop.permute.xlu1 %2211 }
 0x4b4   :  { %v1738_v11 = vpop.xlane.xlu0 %1737 }
 0x4b8   :  { %v1759_v12 = vpop.xlane.xlu0 %1758 }
 0x4b9   :  { %3116 = vrcp.f32 %v1759_v12 }
 0x4ba   :  { %3118 = vrcp.f32 %v1738_v11 }
 0x4bc   :  { %v1744_v29 = vpop.xlane.xlu0 %1743 }
 0x4c2   :  { %v1753_v31 = vpop.xlane.xlu1 %1752 }
 0x4c6   :  { %v3117_v7 = vpop.eup %3116  ;;  %v1741_v32 = vpop.xlane.xlu1 %1740 }
 0x4c7   :  { %v1805_v14 = vmul.f32 %v3117_v7, %v3747_v18  ;;  %v1750_v18 = vpop.xlane.xlu0 %1749  ;;  %v3119_v40 = vpop.eup %3118 }
 0x4c8   :  { %v1798_v48 = vmul.f32 %v3119_v40, %v3743_v16 }
 0x4c9   :  { %v1815_v58 = vmul.f32 %v3817_v41, %v1805_v14 }
 0x4cb   :  { %v1823_v0 = vsub.f32 %v1797_v5, %v1815_v58  ;;  %v1756_v33 = vpop.xlane.xlu0 %1755 }
 0x4cd   :  { %2994 = vmatmul.mubr.msk.f32.vlgmr.msra.gmra.mxu0 %vm1636_vm3, %v1823_v0 }
 0x4ce   :  { %3002 = vmatpush3.msra.mxu0 %v1984_v3  ;;  %3003 = vmatprep.mubr.msk.f32.mxu0 %vm3337_vm1, %v3336_v50 }
 0x4cf   :  { %3011 = vmatprep.subr.mxu0 %v3336_v50 }
 0x4e2   :  { %v1762_v51 = vpop.xlane.xlu1 %1761 }
 0x4e3   :  { %3120 = vrcp.f32 %v1762_v51 }
 0x4e4   :  { %3122 = vrcp.f32 %v1744_v29 }
 0x4e5   :  { %3124 = vrcp.f32 %v1741_v32 }
 0x4e6   :  { %v1765_v35 = vpop.xlane.xlu1 %1764 }
 0x4e7   :  { %3126 = vrcp.f32 %v1765_v35  ;;  %v1768_v36 = vpop.xlane.xlu0 %1767 }
 0x4e8   :  { %3128 = vrcp.f32 %v1768_v36 }
 0x4e9   :  { %3130 = vrcp.f32 %v1747_v8 }
 0x4ea   :  { %3132 = vrcp.f32 %v1750_v18  ;;  %v1771_v37 = vpop.xlane.xlu1 %1770 }
 0x4eb   :  { %3134 = vrcp.f32 %v1771_v37  ;;  %v1774_v38 = vpop.xlane.xlu0 %1773 }
 0x4ec   :  { %3136 = vrcp.f32 %v1774_v38 }
 0x4ed   :  { %3138 = vrcp.f32 %v1753_v31 }
 0x4ee   :  { %3140 = vrcp.f32 %v1756_v33  ;;  %v1777_v39 = vpop.xlane.xlu1 %1776 }
 0x4ef   :  { %3142 = vrcp.f32 %v1777_v39  ;;  %v1780_v42 = vpop.xlane.xlu0 %1779 }
 0x4f0   :  { %v3121_v43 = vpop.eup %3120  ;;  %3144 = vrcp.f32 %v1780_v42 }
 0x4f1   :  { %v1806_v44 = vmul.f32 %v3121_v43, %v3778_v55  ;;  %v3123_v46 = vpop.eup %3122 }
 0x4f2   :  { %v3125_v47 = vpop.eup %3124  ;;  %v1800_v16 = vmul.f32 %v3123_v46, %v3751_v10  ;;  %v2364_v7 = vpop.permute.xlu1 %2363 }
 0x4f3   :  { %v1816_v19 = vmul.f32 %v3817_v41, %v1806_v44  ;;  %v1799_v25 = vmul.f32 %v3125_v47, %v3765_v28 }
 0x4f4   :  { %v3127_v49 = vpop.eup %3126 }
 0x4f5   :  { %v3129_v53 = vpop.eup %3128  ;;  %v1807_v52 = vmul.f32 %v3127_v49, %v3782_v30  ;;  %v1824_v17 = vsub.f32 %v1798_v48, %v1816_v19 }
 0x4f6   :  { %v3131_v24 = vpop.eup %3130  ;;  %v1808_v56 = vmul.f32 %v3129_v53, %v3784_v57 }
 0x4f7   :  { %v3133_v20 = vpop.eup %3132  ;;  %2999 = vmatmul.mubr.msk.f32.vlgmr.msra.gmra.mxu1 %vm1636_vm3, %v1824_v17  ;;  %v1817_v55 = vmul.f32 %v3817_v41, %v1807_v52  ;;  %v1801_v6 = vmul.f32 %v3131_v24, %v3724_v54  ;;  %v2477_v17 = vld [vmem:[#allocation9] sm:$0xff]  ;;  %v3342_v24 = vmov 0  }
 0x4f8   :  { %v3135_v34 = vpop.eup %3134  ;;  %3007 = vmatpush3.msra.mxu1 %v2060_v23  ;;  %3008 = vmatprep.mubr.msk.f32.mxu1 %vm3337_vm1, %v3336_v50  ;;  %v1818_v30 = vmul.f32 %v3817_v41, %v1808_v56 }
 0x4f9   :  { %v3137_v62 = vpop.eup %3136  ;;  %v1809_v63 = vmul.f32 %v3135_v34, %v3790_v60  ;;  %3016 = vmatprep.subr.mxu1 %v3336_v50  ;;  %v1825_v57 = vsub.f32 %v1799_v25, %v1817_v55  ;;  %v1802_v60 = vmul.f32 %v3133_v20, %v3755_v21  ;;  %v2288_v21 = vpop.permute.xlu0 %2287  ;;  %3080 = vset.pattern.permute.xlu0 %v3342_v24  ;;  %v2478_v25 = vld [vmem:[#allocation9 + $0x8] sm:$0xff] }
 0x4fa   :  { %v3139_v2 = vpop.eup %3138  ;;  %v1810_v28 = vmul.f32 %v3137_v62, %v3792_v61  ;;  %v1826_v13 = vsub.f32 %v1800_v16, %v1818_v30  ;;  %3081 = vset.pattern.permute.xlu1 %v3342_v24 }
 0x4fb   :  { %v3141_v4 = vpop.eup %3140  ;;  %3004 = vmatmul.mubr.msk.f32.vlgmr.msra.gmra.mxu0 %vm1636_vm3, %v1825_v57  ;;  %v1819_v8 = vmul.f32 %v3817_v41, %v1809_v63 }
 0x4fc   :  { %v3143_v10 = vpop.eup %3142  ;;  %3009 = vmatmul.mubr.msk.f32.vlgmr.msra.gmra.mxu1 %vm1636_vm3, %v1826_v13  ;;  %3012 = vmatpush3.msra.mxu0 %v3812_v9  ;;  %v1820_v59 = vmul.f32 %v3817_v41, %v1810_v28 }
 0x4fd   :  { %v3145_v11 = vpop.eup %3144  ;;  %v1811_v61 = vmul.f32 %v3143_v10, %v3798_v1  ;;  %3017 = vmatpush3.msra.mxu1 %v3826_v27  ;;  %3013 = vmatprep.mubr.msk.f32.mxu0 %vm3337_vm1, %v3336_v50  ;;  %v1827_v54 = vsub.f32 %v1801_v6, %v1819_v8  ;;  %v1803_v1 = vmul.f32 %v3139_v2, %v3757_v22 }
 0x4fe   :  { %v1812_v12 = vmul.f32 %v3145_v11, %v3800_v15  ;;  %3018 = vmatprep.mubr.msk.f32.mxu1 %vm3337_vm1, %v3336_v50  ;;  %3021 = vmatprep.subr.mxu0 %v3336_v50  ;;  %v1828_v9 = vsub.f32 %v1802_v60, %v1820_v59  ;;  %v1804_v15 = vmul.f32 %v3141_v4, %v3761_v26  ;;  %v2680_v11 = vld [vmem:[#allocation14 + $0x18] sm:$0xff] }
 0x4ff   :  { %3026 = vmatprep.subr.mxu1 %v3336_v50  ;;  %3014 = vmatmul.mubr.msk.f32.vlgmr.msra.gmra.mxu0 %vm1636_vm3, %v1827_v54  ;;  %v1821_v45 = vmul.f32 %v3817_v41, %v1811_v61  ;;  %v2679_v54 = vld [vmem:[#allocation14 + $0x10] sm:$0xff] }
 0x500   :  { %3019 = vmatmul.mubr.msk.f32.vlgmr.msra.gmra.mxu1 %vm1636_vm3, %v1828_v9  ;;  %3022 = vmatpush3.msra.mxu0 %v2288_v21  ;;  %v1822_v14 = vmul.f32 %v3817_v41, %v1812_v12  ;;  %v2678_v9 = vld [vmem:[#allocation14 + $0x8] sm:$0xff]  ;;  %v2677_v21 = vld [vmem:[#allocation14] sm:$0xff] }
 0x501   :  { %3027 = vmatpush3.msra.mxu1 %v2364_v7  ;;  %3023 = vmatprep.mubr.msk.f32.mxu0 %vm3337_vm1, %v3336_v50  ;;  %v1829_v3 = vsub.f32 %v1803_v1, %v1821_v45  ;;  %v2670_v45 = vld [vmem:[#allocation11 + $0x8] sm:$0xff] }
 0x502   :  { %3028 = vmatprep.mubr.msk.f32.mxu1 %vm3337_vm1, %v3336_v50  ;;  %v1830_v5 = vsub.f32 %v1804_v15, %v1822_v14  ;;  %v2669_v15 = vld [vmem:[#allocation11] sm:$0xff] }
 0x503   :  { %3024 = vmatmul.mubr.msk.f32.vlgmr.msra.gmra.mxu0 %vm1636_vm3, %v1829_v3 }
 0x504   :  { %3029 = vmatmul.mubr.msk.f32.vlgmr.msra.gmra.mxu1 %vm1636_vm3, %v1830_v5  ;;  %3035 = vmatprep.mubr.msk.f32.mxu0 %vm2452_vm4, %v2477_v17 }
 0x505   :  { %3042 = vmatprep.mubr.msk.f32.mxu1 %vm2452_vm4, %v2477_v17 }
 0x58d   :  { %v1903_v22 = vpop.f32.mrf.mxu0 }
 0x58f   :  { %v2995_v58 = vpop.f32.mrf.mxu0 }
 0x590   :  { %v2674_v58 = vld [vmem:[#allocation12 + $0x8] sm:$0xff] }
 0x5b7   :  { %v1979_v0 = vpop.f32.mrf.mxu1 }
 0x5b8   :  { %2440 = vrot.lane.b32.xlu0 %v1979_v0, %s3323_s15 }
 0x5b9   :  { %v3000_v26 = vpop.f32.mrf.mxu1 }
 0x5bb   :  { %v2055_v41 = vpop.f32.mrf.mxu0 }
 0x5bc   :  { %v2131_v23 = vpop.f32.mrf.mxu1 }
 0x5bd   :  { %v3005_v27 = vpop.f32.mrf.mxu0 }
 0x5be   :  { %v3010_v29 = vpop.f32.mrf.mxu1 }
 0x5bf   :  { %v2207_v31 = vpop.f32.mrf.mxu0 }
 0x5c0   :  { %v2283_v18 = vpop.f32.mrf.mxu1 }
 0x5c1   :  { %2457 = vrot.lane.b32.xlu0 %v2283_v18, %s3323_s15  ;;  %v3015_v50 = vpop.f32.mrf.mxu0 }
 0x5c2   :  { %v3020_v32 = vpop.f32.mrf.mxu1 }
 0x5c3   :  { %v2359_v51 = vpop.f32.mrf.mxu0 }
 0x5c4   :  { %2461 = vrot.lane.b32.xlu1 %v2359_v51, %s3331_s2  ;;  %v2435_v33 = vpop.f32.mrf.mxu1 }
 0x5c5   :  { %2444 = vrot.lane.b32.xlu0 %v2055_v41, %s3331_s2  ;;  %v3025_v35 = vpop.f32.mrf.mxu0 }
 0x5c6   :  { %v3030_v36 = vpop.f32.mrf.mxu1 }
 0x5c8   :  { %2465 = vrot.lane.b32.xlu1 %v2435_v33, %s3341_s0 }
 0x5cc   :  { %2448 = vrot.lane.b32.xlu1 %v2131_v23, %s3341_s0 }
 0x62a   :  { %v2441_v37 = vpop.permute.xlu0 %2440 }
 0x62b   :  { %v2451_v48 = vsel %vm1636_vm3, %v1903_v22, %v2441_v37  ;;  %v2673_v22 = vld [vmem:[#allocation12] sm:$0xff] }
 0x633   :  { %v2458_v38 = vpop.permute.xlu0 %2457 }
 0x634   :  { %v2468_v40 = vsel %vm1636_vm3, %v2207_v31, %v2458_v38 }
 0x636   :  { %v2462_v39 = vpop.permute.xlu1 %2461 }
 0x637   :  { %v2469_v42 = vsel %vm2452_vm4, %v2468_v40, %v2462_v39  ;;  %v2445_v44 = vpop.permute.xlu0 %2444 }
 0x638   :  { %v2453_v19 = vsel %vm2452_vm4, %v2451_v48, %v2445_v44 }
 0x63a   :  { %v2466_v43 = vpop.permute.xlu1 %2465 }
 0x63b   :  { %v2470_v46 = vsel %vm2454_vm5, %v2469_v42, %v2466_v43 }
 0x63c   :  { %v2474_v47 = vsel %vm135_vm0, %v2470_v46, 0.0 }
 0x63d   :  { %2475 = vadd.xlane.f32.xlu0 %v2474_v47 }
 0x63e   :  { %v2449_v49 = vpop.permute.xlu1 %2448 }
 0x63f   :  { %v2455_v53 = vsel %vm2454_vm5, %v2453_v19, %v2449_v49 }
 0x640   :  { %v2471_v52 = vsel %vm135_vm0, %v2455_v53, 0.0 }
 0x641   :  { %2472 = vadd.xlane.f32.xlu1 %v2471_v52 }
 0x6c6   :  { %v2476_v56 = vpop.xlane.xlu0 %2475 }
 0x6c7   :  { %3031 = vmatprep.subr.mxu0 %v2476_v56 }
 0x6c8   :  { %3032 = vmatpush3.msra.mxu0 %v2476_v56 }
 0x6ca   :  { %v2473_v20 = vpop.xlane.xlu1 %2472 }
 0x6cb   :  { %3033 = vmatprep.subr.mxu0 %v2473_v20 }
 0x6cc   :  { %3034 = vmatpush3.msra.mxu0 %v2473_v20 }
 0x6cd   :  { %3036 = vmatmul.mubr.msk.f32.vlgmr.msra.gmra.mxu0 %vm2452_vm4, %v2478_v25  ;;  %3045 = vmatprep.subr.mxu0 %v2680_v11 }
 0x6ce   :  { %3046 = vmatpush3.msra.mxu0 %v2680_v11 }
 0x6cf   :  { %3047 = vmatprep.subr.mxu0 %v2679_v54 }
 0x6d0   :  { %3048 = vmatpush3.msra.mxu0 %v2679_v54 }
 0x6d1   :  { %3049 = vmatprep.subr.mxu0 %v2678_v9 }
 0x6d2   :  { %3050 = vmatpush3.msra.mxu0 %v2678_v9 }
 0x6d3   :  { %3051 = vmatprep.subr.mxu0 %v2677_v21 }
 0x6d4   :  { %3052 = vmatpush3.msra.mxu0 %v2677_v21 }
 0x78d   :  { %v3037_v55 = vpop.f32.mrf.mxu0 }
 0x78e   :  { %2567 = vperm.xlu0 %3080, %v3037_v55  }
 0x78f   :  { %v2551_v34 = vpop.f32.mrf.mxu0 }
 0x790   :  { %2562 = vperm.xlu1 %3081, %v2551_v34  }
 0x809   :  { %v2568_v16 = vpop.permute.xlu0 %2567 }
 0x80a   :  { %v2571_v30 = vsub.f32 %v2470_v46, %v2568_v16 }
 0x80b   :  { %v2563_v62 = vpop.permute.xlu1 %2562 }
 0x80c   :  { %v2573_v63 = vmul.f32 %v2571_v30, %v2571_v30  ;;  %v2570_v57 = vsub.f32 %v2455_v53, %v2563_v62 }
 0x80e   :  { %v2572_v2 = vmul.f32 %v2570_v57, %v2570_v57  ;;  %v2577_v28 = vsel %vm135_vm0, %v2573_v63, 0.0 }
 0x80f   :  { %2578 = vadd.xlane.f32.xlu1 %v2577_v28 }
 0x810   :  { %v2574_v13 = vsel %vm135_vm0, %v2572_v2, 0.0 }
 0x811   :  { %2575 = vadd.xlane.f32.xlu0 %v2574_v13 }
 0x898   :  { %v2579_v4 = vpop.xlane.xlu1 %2578 }
 0x899   :  { %3038 = vmatprep.subr.mxu1 %v2579_v4 }
 0x89a   :  { %v2576_v6 = vpop.xlane.xlu0 %2575  ;;  %3039 = vmatpush3.msra.mxu1 %v2579_v4 }
 0x89b   :  { %3040 = vmatprep.subr.mxu1 %v2576_v6 }
 0x89c   :  { %3041 = vmatpush3.msra.mxu1 %v2576_v6 }
 0x89d   :  { %3043 = vmatmul.mubr.msk.f32.vlgmr.msra.gmra.mxu1 %vm2452_vm4, %v2478_v25 }
 0x95d   :  { %v3044_v8 = vpop.f32.mrf.mxu1 }
 0x95e   :  { %v2652_v10 = vadd.f32 1e-05, %v3044_v8 }
 0x95f   :  { %v2646_v60 = vpop.f32.mrf.mxu1 }
 0x960   :  { %3146 = vrsqrt.f32 %v2652_v10  ;;  %v2647_v59 = vadd.f32 1e-05, %v2646_v60 }
 0x962   :  { %3148 = vrsqrt.f32 %v2647_v59 }
 0x96d   :  { %v3147_v61 = vpop.eup %3146 }
 0x96e   :  { %2664 = vperm.xlu0 %3080, %v3147_v61  }
 0x96f   :  { %v3149_v12 = vpop.eup %3148 }
 0x970   :  { %2659 = vperm.xlu1 %3081, %v3149_v12  }
 0x9e9   :  { %v2665_v1 = vpop.permute.xlu0 %2664 }
 0x9ea   :  { %v2668_v7 = vmul.f32 %v2665_v1, %v2571_v30 }
 0x9eb   :  { %v2660_v14 = vpop.permute.xlu1 %2659 }
 0x9ec   :  { %v2667_v3 = vmul.f32 %v2660_v14, %v2570_v57  ;;  %v2672_v5 = vmul.f32 %v2670_v45, %v2668_v7 }
 0x9ee   :  { %v2671_v0 = vmul.f32 %v2669_v15, %v2667_v3  ;;  %v2676_v41 = vadd.f32 %v2674_v58, %v2672_v5 }
 0x9f0   :  { %v2675_v26 = vadd.f32 %v2673_v22, %v2671_v0 }
 0x9f2   :  { %3053 = vmatprep.mubr.msk.f32.mxu0 %vm135_vm0, %v2675_v26 }
 0x9f3   :  { %3054 = vmatmul.mubr.msk.f32.vlgmr.msra.gmra.mxu0 %vm135_vm0, %v2676_v41 }
 0xab3   :  { %v3055_v23 = vpop.f32.mrf.mxu0 }
 0xab4   :  { %2763 = vst.msk [vmem:[#allocation15 + $0x8] sm:$0xff] %vm135_vm0, %v3055_v23 }
 0xab5   :  { %v2753_v27 = vpop.f32.mrf.mxu0 }
 0xab6   :  { %2762 = vst.msk [vmem:[#allocation15] sm:$0xff] %vm135_vm0, %v2753_v27 }
 0xab7   :  { %3301 = shalt.err (!%p3298_p11)
}
 0xab8   :  { %2775 = dma.vmem_to_hbm [thread:$0]  %s2770_s17, 256, %s3906_s9, [#allocation5], %s3322_s14, %s3322_s14, %s3323_s15  }
 0xab9   :  { %3318 = dma.done.wait [#allocation5], 256  }
 0xaba   :  { %3319 = vsyncadd [#allocation5], 4294967040 }
 0xabb   :  { %2779 = vsyncpa [#allocation4], 1 }
 0xabc   :  { %2780 = vsyncpa [#allocation7], 1 }
 0xabd   :  { %2781 = vsyncpa [#allocation10], 1 }
 0xabe   :  { %2782 = vsyncpa [#allocation13], 1 }
 0xabf   :  { %2783 = vsyncpa [#allocation5], 1 }

</bundles_post_ra>
